<compile_context>
chip_gen: v7x
topology: tpu7x:2x2x1
jax: 0.10.0
libtpu: 0.0.40
codegen_flags: <defaults>
</compile_context>

<pallas_src>
import functools

import jax
import jax.numpy as jnp
from jax.experimental import pallas as pl
from jax.experimental.pallas import tpu as pltpu


def _gru_encoder_kernel(tok_ref,      # VMEM: (S, 1) int32 token ids
                        emb_ref,      # VMEM: (V, H) f32 embedding table
                        w_in_ref,     # VMEM: (L, H, 4H) input weights  [r|z|n_in|0]
                        w_rec_ref,    # VMEM: (L, H, 4H) recur. weights [r|z|0|n_rec]
                        b_ref,        # VMEM: (L, 4H) fused biases [b_r|b_z|b_ih_n|b_hh_n]
                        out_ref,      # VMEM out: (S, H) top-layer outputs
                        hid_ref,      # VMEM out: (L, H) final hidden state
                        *, seq_len, hidden_size, num_layers, vocab_size):
    S, H, L, V = seq_len, hidden_size, num_layers, vocab_size
    f32 = jnp.float32

    # -------- prologue (hoisted off the recurrent critical path) ----------
    # Embedding lookup as a single one-hot MXU matmul (MXU is idle in setup).
    tok_col = tok_ref[...]                                       # (S, 1) int32
    col_ids = jax.lax.broadcasted_iota(jnp.int32, (S, V), 1)     # (S, V)
    onehot = (col_ids == tok_col).astype(f32)                    # (S, V)
    x_emb = jnp.dot(onehot, emb_ref[...], preferred_element_type=f32)   # (S, H)

    # Weights / biases loaded once (not per step).
    w_in = [w_in_ref[l] for l in range(L)]        # (H, 4H) each
    w_rec = [w_rec_ref[l] for l in range(L)]      # (H, 4H) each
    bias = [b_ref[l].reshape(1, 4 * H) for l in range(L)]

    # Layer-0 input gates for the whole sequence in ONE matmul, bias folded in.
    gi0 = jnp.dot(x_emb, w_in[0], preferred_element_type=f32) + bias[0]  # (S, 4H)

    def apply_gates(g, h_prev):
        # g columns: [gi_r+gh_r+b_r | gi_z+gh_z+b_z | gi_n+b_ih_n | gh_n+b_hh_n]
        r = jax.nn.sigmoid(g[:, 0 * H:1 * H])
        z = jax.nn.sigmoid(g[:, 1 * H:2 * H])
        n = jnp.tanh(g[:, 2 * H:3 * H] + r * g[:, 3 * H:4 * H])
        return n + z * (h_prev - n)                    # == (1-z)*n + z*h_prev

    # -------- serial recurrence over time ----------------------------------
    # h[l]  : hidden state of layer l (carried in registers).
    # gh[l] : recurrent projection h[l](t-1) @ W_rec[l] (+ bias for l >= 1),
    #         issued eagerly as soon as h[l] is produced so it overlaps later
    #         layers / the next step and stays off the serial critical path.
    h = [jnp.zeros((1, H), f32) for _ in range(L)]
    gh = [jnp.zeros((1, 4 * H), f32)] + [bias[l] for l in range(1, L)]

    # NOTE: statically unrolled — fine for S <= MAX_LENGTH (=20).  For much
    # longer sequences, switch to lax.fori_loop(..., unroll=2..4) with h (and
    # gh) carried as loop state to bound code size and vreg live ranges.
    for t in range(S):
        x = None
        for l in range(L):
            if l == 0:
                g = gi0[t:t + 1, :] + gh[0]
            else:
                g = jnp.dot(x, w_in[l], preferred_element_type=f32) + gh[l]
            h[l] = apply_gates(g, h[l])
            if t + 1 < S:
                # Eager recurrent projection for step t+1 (depends only on
                # h[l](t)) — the scheduler hoists it off the critical path.
                gh_new = jnp.dot(h[l], w_rec[l], preferred_element_type=f32)
                gh[l] = gh_new if l == 0 else gh_new + bias[l]
            x = h[l]
        out_ref[pl.ds(t, 1), :] = x            # one row store per step

    for l in range(L):
        hid_ref[pl.ds(l, 1), :] = h[l]


def _pack_gru_params(w_ih, w_hh, b_ih, b_hh):
    """Pack PyTorch-layout GRU params into the kernel's padded-column layout.

    w_ih / w_hh: (L, 3H, H), gate order (r, z, n); b_ih / b_hh: (L, 3H).
    Returns:
      w_in : (L, H, 4H)  columns [W_ir^T | W_iz^T | W_in^T | 0]
      w_rec: (L, H, 4H)  columns [W_hr^T | W_hz^T | 0     | W_hn^T]
      b    : (L, 4H)     [b_ih_r+b_hh_r | b_ih_z+b_hh_z | b_ih_n | b_hh_n]
    """
    L, threeH, H = w_ih.shape
    f32 = jnp.float32
    wi = jnp.transpose(w_ih, (0, 2, 1)).astype(f32)              # (L, H, 3H)
    wh = jnp.transpose(w_hh, (0, 2, 1)).astype(f32)              # (L, H, 3H)
    zeros = jnp.zeros((L, H, H), f32)
    w_in = jnp.concatenate([wi, zeros], axis=2)                  # (L, H, 4H)
    w_rec = jnp.concatenate([wh[:, :, :2 * H], zeros, wh[:, :, 2 * H:]],
                            axis=2)                              # (L, H, 4H)
    b = jnp.concatenate([(b_ih[:, :2 * H] + b_hh[:, :2 * H]).astype(f32),
                         b_ih[:, 2 * H:].astype(f32),
                         b_hh[:, 2 * H:].astype(f32)], axis=1)   # (L, 4H)
    return w_in, w_rec, b


def encoder_basic_forward(tokens, emb, w_ih, w_hh, b_ih, b_hh):
    """Pallas-backed equivalent of EncoderBasic.forward.

    tokens: (S,) int32 token ids
    emb:    (V, H) float32 embedding table
    w_ih:   (L, 3H, H), w_hh: (L, 3H, H), b_ih/b_hh: (L, 3H)
    returns (encoder_outputs (S, H), encoder_hidden (L, 1, H))
    """
    S = int(tokens.shape[0])
    V, H = emb.shape
    L = w_ih.shape[0]

    w_in, w_rec, b = _pack_gru_params(w_ih, w_hh, b_ih, b_hh)

    kernel = functools.partial(_gru_encoder_kernel, seq_len=S, hidden_size=H,
                               num_layers=L, vocab_size=V)

    def full(shape):
        return pl.BlockSpec(shape, lambda i: (0,) * len(shape))

    outputs, hidden = pl.pallas_call(
        kernel,
        out_shape=(
            jax.ShapeDtypeStruct((S, H), jnp.float32),   # encoder_outputs
            jax.ShapeDtypeStruct((L, H), jnp.float32),   # encoder_hidden (flat)
        ),
        grid=(1,),                        # whole sequence in one invocation
        in_specs=[
            full((S, 1)),                 # token ids
            full((V, H)),                 # embedding table (VMEM-resident)
            full((L, H, 4 * H)),          # packed input weights
            full((L, H, 4 * H)),          # packed recurrent weights
            full((L, 4 * H)),             # fused biases
        ],
        out_specs=(
            full((S, H)),
            full((L, H)),
        ),
        compiler_params=pltpu.CompilerParams(
            dimension_semantics=("arbitrary",),
        ),
    )(tokens.astype(jnp.int32).reshape(S, 1),
      emb.astype(jnp.float32), w_in, w_rec, b)

    return outputs, hidden.reshape(L, 1, H)


def _reference_forward(tokens, emb, w_ih, w_hh, b_ih, b_hh):
    """Pure-JAX reference matching torch.nn.GRU semantics (gate order r,z,n)."""
    H = emb.shape[1]
    L = w_ih.shape[0]
    h = jnp.zeros((L, H), jnp.float32)
    outs = []
    for t in range(tokens.shape[0]):
        x = emb[tokens[t]]
        new_h = []
        for l in range(L):
            gi = x @ w_ih[l].T + b_ih[l]
            gh = h[l] @ w_hh[l].T + b_hh[l]
            r = jax.nn.sigmoid(gi[:H] + gh[:H])
            z = jax.nn.sigmoid(gi[H:2 * H] + gh[H:2 * H])
            n = jnp.tanh(gi[2 * H:] + r * gh[2 * H:])
            hl = (1.0 - z) * n + z * h[l]
            new_h.append(hl)
            x = hl
        h = jnp.stack(new_h)
        outs.append(x)
    return jnp.stack(outs), h.reshape(L, 1, H)


if __name__ == "__main__":
    # Small shapes consistent with the module: vocab=50, hidden=32 (embedding
    # dim defines hidden_size), seq_len=8 (<= MAX_LENGTH=20), num_layers=2.
    V, H, S, L = 50, 32, 8, 2

    key = jax.random.PRNGKey(0)
    k_emb, k_tok, k_wih, k_whh, k_bih, k_bhh = jax.random.split(key, 6)

    emb = jax.random.normal(k_emb, (V, H), dtype=jnp.float32)
    tokens = jax.random.randint(k_tok, (S,), 0, V, dtype=jnp.int32)

    # Deterministic GRU parameter init (uniform, PyTorch-style scale 1/sqrt(H)).
    bound = 1.0 / jnp.sqrt(jnp.float32(H))
    w_ih = jax.random.uniform(k_wih, (L, 3 * H, H), jnp.float32, -bound, bound)
    w_hh = jax.random.uniform(k_whh, (L, 3 * H, H), jnp.float32, -bound, bound)
    b_ih = jax.random.uniform(k_bih, (L, 3 * H), jnp.float32, -bound, bound)
    b_hh = jax.random.uniform(k_bhh, (L, 3 * H), jnp.float32, -bound, bound)

    enc_out, enc_hid = encoder_basic_forward(tokens, emb, w_ih, w_hh, b_ih, b_hh)
    enc_out = jax.block_until_ready(enc_out)
    enc_hid = jax.block_until_ready(enc_hid)

    ref_out, ref_hid = _reference_forward(tokens, emb, w_ih, w_hh, b_ih, b_hh)

    assert enc_out.shape == (S, H) and enc_hid.shape == (L, 1, H)
    assert jnp.allclose(enc_out, ref_out, atol=1e-4, rtol=1e-4)
    assert jnp.allclose(enc_hid, ref_hid, atol=1e-4, rtol=1e-4)

    print("KERNEL_OK")
</pallas_src>

<mosaic_0001>
module attributes {stable_mosaic.version = 11 : i64} {
  func.func @_gru_encoder_kernel(%arg0: i32, %arg1: memref<8x1xi32, #tpu.memory_space<vmem>>, %arg2: memref<50x32xf32, #tpu.memory_space<vmem>>, %arg3: memref<2x32x128xf32, #tpu.memory_space<vmem>>, %arg4: memref<2x32x128xf32, #tpu.memory_space<vmem>>, %arg5: memref<2x128xf32, #tpu.memory_space<vmem>>, %arg6: memref<8x32xf32, #tpu.memory_space<vmem>>, %arg7: memref<2x32xf32, #tpu.memory_space<vmem>>) attributes {dimension_semantics = [#tpu.dimension_semantics<arbitrary>], iteration_bounds = array<i64: 1>, scalar_prefetch = 0 : i64, scratch_operands = 0 : i64, tpu.core_type = #tpu.core_type<tc>, window_params = [{pipeline_mode = #tpu.pipeline_mode<synchronous>, transform_indices = @transform_0, window_bounds = array<i64: 8, 1>}, {pipeline_mode = #tpu.pipeline_mode<synchronous>, transform_indices = @transform_1, window_bounds = array<i64: 50, 32>}, {pipeline_mode = #tpu.pipeline_mode<synchronous>, transform_indices = @transform_2, window_bounds = array<i64: 2, 32, 128>}, {pipeline_mode = #tpu.pipeline_mode<synchronous>, transform_indices = @transform_3, window_bounds = array<i64: 2, 32, 128>}, {pipeline_mode = #tpu.pipeline_mode<synchronous>, transform_indices = @transform_4, window_bounds = array<i64: 2, 128>}, {pipeline_mode = #tpu.pipeline_mode<synchronous>, transform_indices = @transform_5, window_bounds = array<i64: 8, 32>}, {pipeline_mode = #tpu.pipeline_mode<synchronous>, transform_indices = @transform_6, window_bounds = array<i64: 2, 32>}]} {
    %c0 = arith.constant 0 : index
    %c0_0 = arith.constant 0 : index
    %0 = vector.load %arg1[%c0, %c0_0] : memref<8x1xi32, #tpu.memory_space<vmem>>, vector<8x1xi32>
    %1 = tpu.iota {dimensions = array<i32: 1>} : vector<8x50xi32>
    %2 = vector.broadcast %0 : vector<8x1xi32> to vector<8x50xi32>
    %3 = arith.cmpi eq, %1, %2 : vector<8x50xi32>
    %4 = arith.extui %3 : vector<8x50xi1> to vector<8x50xi32>
    %5 = arith.sitofp %4 : vector<8x50xi32> to vector<8x50xf32>
    %c0_1 = arith.constant 0 : index
    %c0_2 = arith.constant 0 : index
    %6 = vector.load %arg2[%c0_1, %c0_2] : memref<50x32xf32, #tpu.memory_space<vmem>>, vector<50x32xf32>
    %cst = arith.constant dense<0.000000e+00> : vector<8x32xf32>
    %7 = tpu.matmul %5, %6, %cst {dimension_numbers = #tpu.dot_dimension_numbers<[1], [0], [0], [1], [0, 0, 1, 1], [], []>} : vector<8x50xf32>, vector<50x32xf32>, vector<8x32xf32> -> vector<8x32xf32>
    %c0_3 = arith.constant 0 : index
    %c0_4 = arith.constant 0 : index
    %c0_5 = arith.constant 0 : index
    %8 = vector.load %arg3[%c0_3, %c0_4, %c0_5] : memref<2x32x128xf32, #tpu.memory_space<vmem>>, vector<1x32x128xf32>
    %9 = vector.shape_cast %8 : vector<1x32x128xf32> to vector<32x128xf32>
    %c1 = arith.constant 1 : index
    %c0_6 = arith.constant 0 : index
    %c0_7 = arith.constant 0 : index
    %10 = vector.load %arg3[%c1, %c0_6, %c0_7] : memref<2x32x128xf32, #tpu.memory_space<vmem>>, vector<1x32x128xf32>
    %11 = vector.shape_cast %10 : vector<1x32x128xf32> to vector<32x128xf32>
    %c0_8 = arith.constant 0 : index
    %c0_9 = arith.constant 0 : index
    %c0_10 = arith.constant 0 : index
    %12 = vector.load %arg4[%c0_8, %c0_9, %c0_10] : memref<2x32x128xf32, #tpu.memory_space<vmem>>, vector<1x32x128xf32>
    %13 = vector.shape_cast %12 : vector<1x32x128xf32> to vector<32x128xf32>
    %c1_11 = arith.constant 1 : index
    %c0_12 = arith.constant 0 : index
    %c0_13 = arith.constant 0 : index
    %14 = vector.load %arg4[%c1_11, %c0_12, %c0_13] : memref<2x32x128xf32, #tpu.memory_space<vmem>>, vector<1x32x128xf32>
    %15 = vector.shape_cast %14 : vector<1x32x128xf32> to vector<32x128xf32>
    %c0_14 = arith.constant 0 : index
    %c0_15 = arith.constant 0 : index
    %16 = vector.load %arg5[%c0_14, %c0_15] : memref<2x128xf32, #tpu.memory_space<vmem>>, vector<1x128xf32>
    %17 = vector.shape_cast %16 : vector<1x128xf32> to vector<128xf32>
    %18 = vector.shape_cast %17 : vector<128xf32> to vector<1x128xf32>
    %c1_16 = arith.constant 1 : index
    %c0_17 = arith.constant 0 : index
    %19 = vector.load %arg5[%c1_16, %c0_17] : memref<2x128xf32, #tpu.memory_space<vmem>>, vector<1x128xf32>
    %20 = vector.shape_cast %19 : vector<1x128xf32> to vector<128xf32>
    %21 = vector.shape_cast %20 : vector<128xf32> to vector<1x128xf32>
    %cst_18 = arith.constant dense<0.000000e+00> : vector<8x128xf32>
    %22 = tpu.matmul %7, %9, %cst_18 {dimension_numbers = #tpu.dot_dimension_numbers<[1], [0], [0], [1], [0, 0, 1, 1], [], []>} : vector<8x32xf32>, vector<32x128xf32>, vector<8x128xf32> -> vector<8x128xf32>
    %23 = vector.broadcast %18 : vector<1x128xf32> to vector<8x128xf32>
    %24 = arith.addf %22, %23 : vector<8x128xf32>
    %cst_19 = arith.constant 0.000000e+00 : f32
    %25 = vector.broadcast %cst_19 : f32 to vector<1x32xf32>
    %cst_20 = arith.constant 0.000000e+00 : f32
    %26 = vector.broadcast %cst_20 : f32 to vector<1x32xf32>
    %cst_21 = arith.constant 0.000000e+00 : f32
    %27 = vector.broadcast %cst_21 : f32 to vector<1x128xf32>
    %28 = vector.extract_strided_slice %24 {offsets = [0, 0], sizes = [1, 128], strides = [1, 1]} : vector<8x128xf32> to vector<1x128xf32>
    %29 = arith.addf %28, %27 : vector<1x128xf32>
    %30 = vector.extract_strided_slice %29 {offsets = [0, 0], sizes = [1, 32], strides = [1, 1]} : vector<1x128xf32> to vector<1x32xf32>
    %31 = arith.negf %30 : vector<1x32xf32>
    %32 = math.exp %31 : vector<1x32xf32>
    %cst_22 = arith.constant 1.000000e+00 : f32
    %33 = vector.broadcast %cst_22 : f32 to vector<1x32xf32>
    %34 = arith.addf %33, %32 : vector<1x32xf32>
    %35 = arith.divf %33, %34 : vector<1x32xf32>
    %36 = vector.extract_strided_slice %29 {offsets = [0, 32], sizes = [1, 32], strides = [1, 1]} : vector<1x128xf32> to vector<1x32xf32>
    %37 = arith.negf %36 : vector<1x32xf32>
    %38 = math.exp %37 : vector<1x32xf32>
    %cst_23 = arith.constant 1.000000e+00 : f32
    %39 = vector.broadcast %cst_23 : f32 to vector<1x32xf32>
    %40 = arith.addf %39, %38 : vector<1x32xf32>
    %41 = arith.divf %39, %40 : vector<1x32xf32>
    %42 = vector.extract_strided_slice %29 {offsets = [0, 64], sizes = [1, 32], strides = [1, 1]} : vector<1x128xf32> to vector<1x32xf32>
    %43 = vector.extract_strided_slice %29 {offsets = [0, 96], sizes = [1, 32], strides = [1, 1]} : vector<1x128xf32> to vector<1x32xf32>
    %44 = arith.mulf %35, %43 : vector<1x32xf32>
    %45 = arith.addf %42, %44 : vector<1x32xf32>
    %46 = math.tanh %45 : vector<1x32xf32>
    %47 = arith.subf %25, %46 : vector<1x32xf32>
    %48 = arith.mulf %41, %47 : vector<1x32xf32>
    %49 = arith.addf %46, %48 : vector<1x32xf32>
    %cst_24 = arith.constant dense<0.000000e+00> : vector<1x128xf32>
    %50 = tpu.matmul %49, %13, %cst_24 {dimension_numbers = #tpu.dot_dimension_numbers<[1], [0], [0], [1], [0, 0, 1, 1], [], []>} : vector<1x32xf32>, vector<32x128xf32>, vector<1x128xf32> -> vector<1x128xf32>
    %cst_25 = arith.constant dense<0.000000e+00> : vector<1x128xf32>
    %51 = tpu.matmul %49, %11, %cst_25 {dimension_numbers = #tpu.dot_dimension_numbers<[1], [0], [0], [1], [0, 0, 1, 1], [], []>} : vector<1x32xf32>, vector<32x128xf32>, vector<1x128xf32> -> vector<1x128xf32>
    %52 = arith.addf %51, %21 : vector<1x128xf32>
    %53 = vector.extract_strided_slice %52 {offsets = [0, 0], sizes = [1, 32], strides = [1, 1]} : vector<1x128xf32> to vector<1x32xf32>
    %54 = arith.negf %53 : vector<1x32xf32>
    %55 = math.exp %54 : vector<1x32xf32>
    %cst_26 = arith.constant 1.000000e+00 : f32
    %56 = vector.broadcast %cst_26 : f32 to vector<1x32xf32>
    %57 = arith.addf %56, %55 : vector<1x32xf32>
    %58 = arith.divf %56, %57 : vector<1x32xf32>
    %59 = vector.extract_strided_slice %52 {offsets = [0, 32], sizes = [1, 32], strides = [1, 1]} : vector<1x128xf32> to vector<1x32xf32>
    %60 = arith.negf %59 : vector<1x32xf32>
    %61 = math.exp %60 : vector<1x32xf32>
    %cst_27 = arith.constant 1.000000e+00 : f32
    %62 = vector.broadcast %cst_27 : f32 to vector<1x32xf32>
    %63 = arith.addf %62, %61 : vector<1x32xf32>
    %64 = arith.divf %62, %63 : vector<1x32xf32>
    %65 = vector.extract_strided_slice %52 {offsets = [0, 64], sizes = [1, 32], strides = [1, 1]} : vector<1x128xf32> to vector<1x32xf32>
    %66 = vector.extract_strided_slice %52 {offsets = [0, 96], sizes = [1, 32], strides = [1, 1]} : vector<1x128xf32> to vector<1x32xf32>
    %67 = arith.mulf %58, %66 : vector<1x32xf32>
    %68 = arith.addf %65, %67 : vector<1x32xf32>
    %69 = math.tanh %68 : vector<1x32xf32>
    %70 = arith.subf %26, %69 : vector<1x32xf32>
    %71 = arith.mulf %64, %70 : vector<1x32xf32>
    %72 = arith.addf %69, %71 : vector<1x32xf32>
    %cst_28 = arith.constant dense<0.000000e+00> : vector<1x128xf32>
    %73 = tpu.matmul %72, %15, %cst_28 {dimension_numbers = #tpu.dot_dimension_numbers<[1], [0], [0], [1], [0, 0, 1, 1], [], []>} : vector<1x32xf32>, vector<32x128xf32>, vector<1x128xf32> -> vector<1x128xf32>
    %74 = arith.addf %73, %21 : vector<1x128xf32>
    %c0_29 = arith.constant 0 : index
    %c0_30 = arith.constant 0 : index
    %75 = vector.load %arg6[%c0_29, %c0_30] : memref<8x32xf32, #tpu.memory_space<vmem>>, vector<1x32xf32>
    tpu.vector_store %arg6[%c0_29, %c0_30], %72 {strides = array<i32>} : memref<8x32xf32, #tpu.memory_space<vmem>>, vector<1x32xf32>,
    %76 = vector.extract_strided_slice %24 {offsets = [1, 0], sizes = [1, 128], strides = [1, 1]} : vector<8x128xf32> to vector<1x128xf32>
    %77 = arith.addf %76, %50 : vector<1x128xf32>
    %78 = vector.extract_strided_slice %77 {offsets = [0, 0], sizes = [1, 32], strides = [1, 1]} : vector<1x128xf32> to vector<1x32xf32>
    %79 = arith.negf %78 : vector<1x32xf32>
    %80 = math.exp %79 : vector<1x32xf32>
    %cst_31 = arith.constant 1.000000e+00 : f32
    %81 = vector.broadcast %cst_31 : f32 to vector<1x32xf32>
    %82 = arith.addf %81, %80 : vector<1x32xf32>
    %83 = arith.divf %81, %82 : vector<1x32xf32>
    %84 = vector.extract_strided_slice %77 {offsets = [0, 32], sizes = [1, 32], strides = [1, 1]} : vector<1x128xf32> to vector<1x32xf32>
    %85 = arith.negf %84 : vector<1x32xf32>
    %86 = math.exp %85 : vector<1x32xf32>
    %cst_32 = arith.constant 1.000000e+00 : f32
    %87 = vector.broadcast %cst_32 : f32 to vector<1x32xf32>
    %88 = arith.addf %87, %86 : vector<1x32xf32>
    %89 = arith.divf %87, %88 : vector<1x32xf32>
    %90 = vector.extract_strided_slice %77 {offsets = [0, 64], sizes = [1, 32], strides = [1, 1]} : vector<1x128xf32> to vector<1x32xf32>
    %91 = vector.extract_strided_slice %77 {offsets = [0, 96], sizes = [1, 32], strides = [1, 1]} : vector<1x128xf32> to vector<1x32xf32>
    %92 = arith.mulf %83, %91 : vector<1x32xf32>
    %93 = arith.addf %90, %92 : vector<1x32xf32>
    %94 = math.tanh %93 : vector<1x32xf32>
    %95 = arith.subf %49, %94 : vector<1x32xf32>
    %96 = arith.mulf %89, %95 : vector<1x32xf32>
    %97 = arith.addf %94, %96 : vector<1x32xf32>
    %cst_33 = arith.constant dense<0.000000e+00> : vector<1x128xf32>
    %98 = tpu.matmul %97, %13, %cst_33 {dimension_numbers = #tpu.dot_dimension_numbers<[1], [0], [0], [1], [0, 0, 1, 1], [], []>} : vector<1x32xf32>, vector<32x128xf32>, vector<1x128xf32> -> vector<1x128xf32>
    %cst_34 = arith.constant dense<0.000000e+00> : vector<1x128xf32>
    %99 = tpu.matmul %97, %11, %cst_34 {dimension_numbers = #tpu.dot_dimension_numbers<[1], [0], [0], [1], [0, 0, 1, 1], [], []>} : vector<1x32xf32>, vector<32x128xf32>, vector<1x128xf32> -> vector<1x128xf32>
    %100 = arith.addf %99, %74 : vector<1x128xf32>
    %101 = vector.extract_strided_slice %100 {offsets = [0, 0], sizes = [1, 32], strides = [1, 1]} : vector<1x128xf32> to vector<1x32xf32>
    %102 = arith.negf %101 : vector<1x32xf32>
    %103 = math.exp %102 : vector<1x32xf32>
    %cst_35 = arith.constant 1.000000e+00 : f32
    %104 = vector.broadcast %cst_35 : f32 to vector<1x32xf32>
    %105 = arith.addf %104, %103 : vector<1x32xf32>
    %106 = arith.divf %104, %105 : vector<1x32xf32>
    %107 = vector.extract_strided_slice %100 {offsets = [0, 32], sizes = [1, 32], strides = [1, 1]} : vector<1x128xf32> to vector<1x32xf32>
    %108 = arith.negf %107 : vector<1x32xf32>
    %109 = math.exp %108 : vector<1x32xf32>
    %cst_36 = arith.constant 1.000000e+00 : f32
    %110 = vector.broadcast %cst_36 : f32 to vector<1x32xf32>
    %111 = arith.addf %110, %109 : vector<1x32xf32>
    %112 = arith.divf %110, %111 : vector<1x32xf32>
    %113 = vector.extract_strided_slice %100 {offsets = [0, 64], sizes = [1, 32], strides = [1, 1]} : vector<1x128xf32> to vector<1x32xf32>
    %114 = vector.extract_strided_slice %100 {offsets = [0, 96], sizes = [1, 32], strides = [1, 1]} : vector<1x128xf32> to vector<1x32xf32>
    %115 = arith.mulf %106, %114 : vector<1x32xf32>
    %116 = arith.addf %113, %115 : vector<1x32xf32>
    %117 = math.tanh %116 : vector<1x32xf32>
    %118 = arith.subf %72, %117 : vector<1x32xf32>
    %119 = arith.mulf %112, %118 : vector<1x32xf32>
    %120 = arith.addf %117, %119 : vector<1x32xf32>
    %cst_37 = arith.constant dense<0.000000e+00> : vector<1x128xf32>
    %121 = tpu.matmul %120, %15, %cst_37 {dimension_numbers = #tpu.dot_dimension_numbers<[1], [0], [0], [1], [0, 0, 1, 1], [], []>} : vector<1x32xf32>, vector<32x128xf32>, vector<1x128xf32> -> vector<1x128xf32>
    %122 = arith.addf %121, %21 : vector<1x128xf32>
    %c1_38 = arith.constant 1 : index
    %c0_39 = arith.constant 0 : index
    %123 = vector.load %arg6[%c1_38, %c0_39] : memref<8x32xf32, #tpu.memory_space<vmem>>, vector<1x32xf32>
    tpu.vector_store %arg6[%c1_38, %c0_39], %120 {strides = array<i32>} : memref<8x32xf32, #tpu.memory_space<vmem>>, vector<1x32xf32>,
    %124 = vector.extract_strided_slice %24 {offsets = [2, 0], sizes = [1, 128], strides = [1, 1]} : vector<8x128xf32> to vector<1x128xf32>
    %125 = arith.addf %124, %98 : vector<1x128xf32>
    %126 = vector.extract_strided_slice %125 {offsets = [0, 0], sizes = [1, 32], strides = [1, 1]} : vector<1x128xf32> to vector<1x32xf32>
    %127 = arith.negf %126 : vector<1x32xf32>
    %128 = math.exp %127 : vector<1x32xf32>
    %cst_40 = arith.constant 1.000000e+00 : f32
    %129 = vector.broadcast %cst_40 : f32 to vector<1x32xf32>
    %130 = arith.addf %129, %128 : vector<1x32xf32>
    %131 = arith.divf %129, %130 : vector<1x32xf32>
    %132 = vector.extract_strided_slice %125 {offsets = [0, 32], sizes = [1, 32], strides = [1, 1]} : vector<1x128xf32> to vector<1x32xf32>
    %133 = arith.negf %132 : vector<1x32xf32>
    %134 = math.exp %133 : vector<1x32xf32>
    %cst_41 = arith.constant 1.000000e+00 : f32
    %135 = vector.broadcast %cst_41 : f32 to vector<1x32xf32>
    %136 = arith.addf %135, %134 : vector<1x32xf32>
    %137 = arith.divf %135, %136 : vector<1x32xf32>
    %138 = vector.extract_strided_slice %125 {offsets = [0, 64], sizes = [1, 32], strides = [1, 1]} : vector<1x128xf32> to vector<1x32xf32>
    %139 = vector.extract_strided_slice %125 {offsets = [0, 96], sizes = [1, 32], strides = [1, 1]} : vector<1x128xf32> to vector<1x32xf32>
    %140 = arith.mulf %131, %139 : vector<1x32xf32>
    %141 = arith.addf %138, %140 : vector<1x32xf32>
    %142 = math.tanh %141 : vector<1x32xf32>
    %143 = arith.subf %97, %142 : vector<1x32xf32>
    %144 = arith.mulf %137, %143 : vector<1x32xf32>
    %145 = arith.addf %142, %144 : vector<1x32xf32>
    %cst_42 = arith.constant dense<0.000000e+00> : vector<1x128xf32>
    %146 = tpu.matmul %145, %13, %cst_42 {dimension_numbers = #tpu.dot_dimension_numbers<[1], [0], [0], [1], [0, 0, 1, 1], [], []>} : vector<1x32xf32>, vector<32x128xf32>, vector<1x128xf32> -> vector<1x128xf32>
    %cst_43 = arith.constant dense<0.000000e+00> : vector<1x128xf32>
    %147 = tpu.matmul %145, %11, %cst_43 {dimension_numbers = #tpu.dot_dimension_numbers<[1], [0], [0], [1], [0, 0, 1, 1], [], []>} : vector<1x32xf32>, vector<32x128xf32>, vector<1x128xf32> -> vector<1x128xf32>
    %148 = arith.addf %147, %122 : vector<1x128xf32>
    %149 = vector.extract_strided_slice %148 {offsets = [0, 0], sizes = [1, 32], strides = [1, 1]} : vector<1x128xf32> to vector<1x32xf32>
    %150 = arith.negf %149 : vector<1x32xf32>
    %151 = math.exp %150 : vector<1x32xf32>
    %cst_44 = arith.constant 1.000000e+00 : f32
    %152 = vector.broadcast %cst_44 : f32 to vector<1x32xf32>
    %153 = arith.addf %152, %151 : vector<1x32xf32>
    %154 = arith.divf %152, %153 : vector<1x32xf32>
    %155 = vector.extract_strided_slice %148 {offsets = [0, 32], sizes = [1, 32], strides = [1, 1]} : vector<1x128xf32> to vector<1x32xf32>
    %156 = arith.negf %155 : vector<1x32xf32>
    %157 = math.exp %156 : vector<1x32xf32>
    %cst_45 = arith.constant 1.000000e+00 : f32
    %158 = vector.broadcast %cst_45 : f32 to vector<1x32xf32>
    %159 = arith.addf %158, %157 : vector<1x32xf32>
    %160 = arith.divf %158, %159 : vector<1x32xf32>
    %161 = vector.extract_strided_slice %148 {offsets = [0, 64], sizes = [1, 32], strides = [1, 1]} : vector<1x128xf32> to vector<1x32xf32>
    %162 = vector.extract_strided_slice %148 {offsets = [0, 96], sizes = [1, 32], strides = [1, 1]} : vector<1x128xf32> to vector<1x32xf32>
    %163 = arith.mulf %154, %162 : vector<1x32xf32>
    %164 = arith.addf %161, %163 : vector<1x32xf32>
    %165 = math.tanh %164 : vector<1x32xf32>
    %166 = arith.subf %120, %165 : vector<1x32xf32>
    %167 = arith.mulf %160, %166 : vector<1x32xf32>
    %168 = arith.addf %165, %167 : vector<1x32xf32>
    %cst_46 = arith.constant dense<0.000000e+00> : vector<1x128xf32>
    %169 = tpu.matmul %168, %15, %cst_46 {dimension_numbers = #tpu.dot_dimension_numbers<[1], [0], [0], [1], [0, 0, 1, 1], [], []>} : vector<1x32xf32>, vector<32x128xf32>, vector<1x128xf32> -> vector<1x128xf32>
    %170 = arith.addf %169, %21 : vector<1x128xf32>
    %c2 = arith.constant 2 : index
    %c0_47 = arith.constant 0 : index
    %171 = vector.load %arg6[%c2, %c0_47] : memref<8x32xf32, #tpu.memory_space<vmem>>, vector<1x32xf32>
    tpu.vector_store %arg6[%c2, %c0_47], %168 {strides = array<i32>} : memref<8x32xf32, #tpu.memory_space<vmem>>, vector<1x32xf32>,
    %172 = vector.extract_strided_slice %24 {offsets = [3, 0], sizes = [1, 128], strides = [1, 1]} : vector<8x128xf32> to vector<1x128xf32>
    %173 = arith.addf %172, %146 : vector<1x128xf32>
    %174 = vector.extract_strided_slice %173 {offsets = [0, 0], sizes = [1, 32], strides = [1, 1]} : vector<1x128xf32> to vector<1x32xf32>
    %175 = arith.negf %174 : vector<1x32xf32>
    %176 = math.exp %175 : vector<1x32xf32>
    %cst_48 = arith.constant 1.000000e+00 : f32
    %177 = vector.broadcast %cst_48 : f32 to vector<1x32xf32>
    %178 = arith.addf %177, %176 : vector<1x32xf32>
    %179 = arith.divf %177, %178 : vector<1x32xf32>
    %180 = vector.extract_strided_slice %173 {offsets = [0, 32], sizes = [1, 32], strides = [1, 1]} : vector<1x128xf32> to vector<1x32xf32>
    %181 = arith.negf %180 : vector<1x32xf32>
    %182 = math.exp %181 : vector<1x32xf32>
    %cst_49 = arith.constant 1.000000e+00 : f32
    %183 = vector.broadcast %cst_49 : f32 to vector<1x32xf32>
    %184 = arith.addf %183, %182 : vector<1x32xf32>
    %185 = arith.divf %183, %184 : vector<1x32xf32>
    %186 = vector.extract_strided_slice %173 {offsets = [0, 64], sizes = [1, 32], strides = [1, 1]} : vector<1x128xf32> to vector<1x32xf32>
    %187 = vector.extract_strided_slice %173 {offsets = [0, 96], sizes = [1, 32], strides = [1, 1]} : vector<1x128xf32> to vector<1x32xf32>
    %188 = arith.mulf %179, %187 : vector<1x32xf32>
    %189 = arith.addf %186, %188 : vector<1x32xf32>
    %190 = math.tanh %189 : vector<1x32xf32>
    %191 = arith.subf %145, %190 : vector<1x32xf32>
    %192 = arith.mulf %185, %191 : vector<1x32xf32>
    %193 = arith.addf %190, %192 : vector<1x32xf32>
    %cst_50 = arith.constant dense<0.000000e+00> : vector<1x128xf32>
    %194 = tpu.matmul %193, %13, %cst_50 {dimension_numbers = #tpu.dot_dimension_numbers<[1], [0], [0], [1], [0, 0, 1, 1], [], []>} : vector<1x32xf32>, vector<32x128xf32>, vector<1x128xf32> -> vector<1x128xf32>
    %cst_51 = arith.constant dense<0.000000e+00> : vector<1x128xf32>
    %195 = tpu.matmul %193, %11, %cst_51 {dimension_numbers = #tpu.dot_dimension_numbers<[1], [0], [0], [1], [0, 0, 1, 1], [], []>} : vector<1x32xf32>, vector<32x128xf32>, vector<1x128xf32> -> vector<1x128xf32>
    %196 = arith.addf %195, %170 : vector<1x128xf32>
    %197 = vector.extract_strided_slice %196 {offsets = [0, 0], sizes = [1, 32], strides = [1, 1]} : vector<1x128xf32> to vector<1x32xf32>
    %198 = arith.negf %197 : vector<1x32xf32>
    %199 = math.exp %198 : vector<1x32xf32>
    %cst_52 = arith.constant 1.000000e+00 : f32
    %200 = vector.broadcast %cst_52 : f32 to vector<1x32xf32>
    %201 = arith.addf %200, %199 : vector<1x32xf32>
    %202 = arith.divf %200, %201 : vector<1x32xf32>
    %203 = vector.extract_strided_slice %196 {offsets = [0, 32], sizes = [1, 32], strides = [1, 1]} : vector<1x128xf32> to vector<1x32xf32>
    %204 = arith.negf %203 : vector<1x32xf32>
    %205 = math.exp %204 : vector<1x32xf32>
    %cst_53 = arith.constant 1.000000e+00 : f32
    %206 = vector.broadcast %cst_53 : f32 to vector<1x32xf32>
    %207 = arith.addf %206, %205 : vector<1x32xf32>
    %208 = arith.divf %206, %207 : vector<1x32xf32>
    %209 = vector.extract_strided_slice %196 {offsets = [0, 64], sizes = [1, 32], strides = [1, 1]} : vector<1x128xf32> to vector<1x32xf32>
    %210 = vector.extract_strided_slice %196 {offsets = [0, 96], sizes = [1, 32], strides = [1, 1]} : vector<1x128xf32> to vector<1x32xf32>
    %211 = arith.mulf %202, %210 : vector<1x32xf32>
    %212 = arith.addf %209, %211 : vector<1x32xf32>
    %213 = math.tanh %212 : vector<1x32xf32>
    %214 = arith.subf %168, %213 : vector<1x32xf32>
    %215 = arith.mulf %208, %214 : vector<1x32xf32>
    %216 = arith.addf %213, %215 : vector<1x32xf32>
    %cst_54 = arith.constant dense<0.000000e+00> : vector<1x128xf32>
    %217 = tpu.matmul %216, %15, %cst_54 {dimension_numbers = #tpu.dot_dimension_numbers<[1], [0], [0], [1], [0, 0, 1, 1], [], []>} : vector<1x32xf32>, vector<32x128xf32>, vector<1x128xf32> -> vector<1x128xf32>
    %218 = arith.addf %217, %21 : vector<1x128xf32>
    %c3 = arith.constant 3 : index
    %c0_55 = arith.constant 0 : index
    %219 = vector.load %arg6[%c3, %c0_55] : memref<8x32xf32, #tpu.memory_space<vmem>>, vector<1x32xf32>
    tpu.vector_store %arg6[%c3, %c0_55], %216 {strides = array<i32>} : memref<8x32xf32, #tpu.memory_space<vmem>>, vector<1x32xf32>,
    %220 = vector.extract_strided_slice %24 {offsets = [4, 0], sizes = [1, 128], strides = [1, 1]} : vector<8x128xf32> to vector<1x128xf32>
    %221 = arith.addf %220, %194 : vector<1x128xf32>
    %222 = vector.extract_strided_slice %221 {offsets = [0, 0], sizes = [1, 32], strides = [1, 1]} : vector<1x128xf32> to vector<1x32xf32>
    %223 = arith.negf %222 : vector<1x32xf32>
    %224 = math.exp %223 : vector<1x32xf32>
    %cst_56 = arith.constant 1.000000e+00 : f32
    %225 = vector.broadcast %cst_56 : f32 to vector<1x32xf32>
    %226 = arith.addf %225, %224 : vector<1x32xf32>
    %227 = arith.divf %225, %226 : vector<1x32xf32>
    %228 = vector.extract_strided_slice %221 {offsets = [0, 32], sizes = [1, 32], strides = [1, 1]} : vector<1x128xf32> to vector<1x32xf32>
    %229 = arith.negf %228 : vector<1x32xf32>
    %230 = math.exp %229 : vector<1x32xf32>
    %cst_57 = arith.constant 1.000000e+00 : f32
    %231 = vector.broadcast %cst_57 : f32 to vector<1x32xf32>
    %232 = arith.addf %231, %230 : vector<1x32xf32>
    %233 = arith.divf %231, %232 : vector<1x32xf32>
    %234 = vector.extract_strided_slice %221 {offsets = [0, 64], sizes = [1, 32], strides = [1, 1]} : vector<1x128xf32> to vector<1x32xf32>
    %235 = vector.extract_strided_slice %221 {offsets = [0, 96], sizes = [1, 32], strides = [1, 1]} : vector<1x128xf32> to vector<1x32xf32>
    %236 = arith.mulf %227, %235 : vector<1x32xf32>
    %237 = arith.addf %234, %236 : vector<1x32xf32>
    %238 = math.tanh %237 : vector<1x32xf32>
    %239 = arith.subf %193, %238 : vector<1x32xf32>
    %240 = arith.mulf %233, %239 : vector<1x32xf32>
    %241 = arith.addf %238, %240 : vector<1x32xf32>
    %cst_58 = arith.constant dense<0.000000e+00> : vector<1x128xf32>
    %242 = tpu.matmul %241, %13, %cst_58 {dimension_numbers = #tpu.dot_dimension_numbers<[1], [0], [0], [1], [0, 0, 1, 1], [], []>} : vector<1x32xf32>, vector<32x128xf32>, vector<1x128xf32> -> vector<1x128xf32>
    %cst_59 = arith.constant dense<0.000000e+00> : vector<1x128xf32>
    %243 = tpu.matmul %241, %11, %cst_59 {dimension_numbers = #tpu.dot_dimension_numbers<[1], [0], [0], [1], [0, 0, 1, 1], [], []>} : vector<1x32xf32>, vector<32x128xf32>, vector<1x128xf32> -> vector<1x128xf32>
    %244 = arith.addf %243, %218 : vector<1x128xf32>
    %245 = vector.extract_strided_slice %244 {offsets = [0, 0], sizes = [1, 32], strides = [1, 1]} : vector<1x128xf32> to vector<1x32xf32>
    %246 = arith.negf %245 : vector<1x32xf32>
    %247 = math.exp %246 : vector<1x32xf32>
    %cst_60 = arith.constant 1.000000e+00 : f32
    %248 = vector.broadcast %cst_60 : f32 to vector<1x32xf32>
    %249 = arith.addf %248, %247 : vector<1x32xf32>
    %250 = arith.divf %248, %249 : vector<1x32xf32>
    %251 = vector.extract_strided_slice %244 {offsets = [0, 32], sizes = [1, 32], strides = [1, 1]} : vector<1x128xf32> to vector<1x32xf32>
    %252 = arith.negf %251 : vector<1x32xf32>
    %253 = math.exp %252 : vector<1x32xf32>
    %cst_61 = arith.constant 1.000000e+00 : f32
    %254 = vector.broadcast %cst_61 : f32 to vector<1x32xf32>
    %255 = arith.addf %254, %253 : vector<1x32xf32>
    %256 = arith.divf %254, %255 : vector<1x32xf32>
    %257 = vector.extract_strided_slice %244 {offsets = [0, 64], sizes = [1, 32], strides = [1, 1]} : vector<1x128xf32> to vector<1x32xf32>
    %258 = vector.extract_strided_slice %244 {offsets = [0, 96], sizes = [1, 32], strides = [1, 1]} : vector<1x128xf32> to vector<1x32xf32>
    %259 = arith.mulf %250, %258 : vector<1x32xf32>
    %260 = arith.addf %257, %259 : vector<1x32xf32>
    %261 = math.tanh %260 : vector<1x32xf32>
    %262 = arith.subf %216, %261 : vector<1x32xf32>
    %263 = arith.mulf %256, %262 : vector<1x32xf32>
    %264 = arith.addf %261, %263 : vector<1x32xf32>
    %cst_62 = arith.constant dense<0.000000e+00> : vector<1x128xf32>
    %265 = tpu.matmul %264, %15, %cst_62 {dimension_numbers = #tpu.dot_dimension_numbers<[1], [0], [0], [1], [0, 0, 1, 1], [], []>} : vector<1x32xf32>, vector<32x128xf32>, vector<1x128xf32> -> vector<1x128xf32>
    %266 = arith.addf %265, %21 : vector<1x128xf32>
    %c4 = arith.constant 4 : index
    %c0_63 = arith.constant 0 : index
    %267 = vector.load %arg6[%c4, %c0_63] : memref<8x32xf32, #tpu.memory_space<vmem>>, vector<1x32xf32>
    tpu.vector_store %arg6[%c4, %c0_63], %264 {strides = array<i32>} : memref<8x32xf32, #tpu.memory_space<vmem>>, vector<1x32xf32>,
    %268 = vector.extract_strided_slice %24 {offsets = [5, 0], sizes = [1, 128], strides = [1, 1]} : vector<8x128xf32> to vector<1x128xf32>
    %269 = arith.addf %268, %242 : vector<1x128xf32>
    %270 = vector.extract_strided_slice %269 {offsets = [0, 0], sizes = [1, 32], strides = [1, 1]} : vector<1x128xf32> to vector<1x32xf32>
    %271 = arith.negf %270 : vector<1x32xf32>
    %272 = math.exp %271 : vector<1x32xf32>
    %cst_64 = arith.constant 1.000000e+00 : f32
    %273 = vector.broadcast %cst_64 : f32 to vector<1x32xf32>
    %274 = arith.addf %273, %272 : vector<1x32xf32>
    %275 = arith.divf %273, %274 : vector<1x32xf32>
    %276 = vector.extract_strided_slice %269 {offsets = [0, 32], sizes = [1, 32], strides = [1, 1]} : vector<1x128xf32> to vector<1x32xf32>
    %277 = arith.negf %276 : vector<1x32xf32>
    %278 = math.exp %277 : vector<1x32xf32>
    %cst_65 = arith.constant 1.000000e+00 : f32
    %279 = vector.broadcast %cst_65 : f32 to vector<1x32xf32>
    %280 = arith.addf %279, %278 : vector<1x32xf32>
    %281 = arith.divf %279, %280 : vector<1x32xf32>
    %282 = vector.extract_strided_slice %269 {offsets = [0, 64], sizes = [1, 32], strides = [1, 1]} : vector<1x128xf32> to vector<1x32xf32>
    %283 = vector.extract_strided_slice %269 {offsets = [0, 96], sizes = [1, 32], strides = [1, 1]} : vector<1x128xf32> to vector<1x32xf32>
    %284 = arith.mulf %275, %283 : vector<1x32xf32>
    %285 = arith.addf %282, %284 : vector<1x32xf32>
    %286 = math.tanh %285 : vector<1x32xf32>
    %287 = arith.subf %241, %286 : vector<1x32xf32>
    %288 = arith.mulf %281, %287 : vector<1x32xf32>
    %289 = arith.addf %286, %288 : vector<1x32xf32>
    %cst_66 = arith.constant dense<0.000000e+00> : vector<1x128xf32>
    %290 = tpu.matmul %289, %13, %cst_66 {dimension_numbers = #tpu.dot_dimension_numbers<[1], [0], [0], [1], [0, 0, 1, 1], [], []>} : vector<1x32xf32>, vector<32x128xf32>, vector<1x128xf32> -> vector<1x128xf32>
    %cst_67 = arith.constant dense<0.000000e+00> : vector<1x128xf32>
    %291 = tpu.matmul %289, %11, %cst_67 {dimension_numbers = #tpu.dot_dimension_numbers<[1], [0], [0], [1], [0, 0, 1, 1], [], []>} : vector<1x32xf32>, vector<32x128xf32>, vector<1x128xf32> -> vector<1x128xf32>
    %292 = arith.addf %291, %266 : vector<1x128xf32>
    %293 = vector.extract_strided_slice %292 {offsets = [0, 0], sizes = [1, 32], strides = [1, 1]} : vector<1x128xf32> to vector<1x32xf32>
    %294 = arith.negf %293 : vector<1x32xf32>
    %295 = math.exp %294 : vector<1x32xf32>
    %cst_68 = arith.constant 1.000000e+00 : f32
    %296 = vector.broadcast %cst_68 : f32 to vector<1x32xf32>
    %297 = arith.addf %296, %295 : vector<1x32xf32>
    %298 = arith.divf %296, %297 : vector<1x32xf32>
    %299 = vector.extract_strided_slice %292 {offsets = [0, 32], sizes = [1, 32], strides = [1, 1]} : vector<1x128xf32> to vector<1x32xf32>
    %300 = arith.negf %299 : vector<1x32xf32>
    %301 = math.exp %300 : vector<1x32xf32>
    %cst_69 = arith.constant 1.000000e+00 : f32
    %302 = vector.broadcast %cst_69 : f32 to vector<1x32xf32>
    %303 = arith.addf %302, %301 : vector<1x32xf32>
    %304 = arith.divf %302, %303 : vector<1x32xf32>
    %305 = vector.extract_strided_slice %292 {offsets = [0, 64], sizes = [1, 32], strides = [1, 1]} : vector<1x128xf32> to vector<1x32xf32>
    %306 = vector.extract_strided_slice %292 {offsets = [0, 96], sizes = [1, 32], strides = [1, 1]} : vector<1x128xf32> to vector<1x32xf32>
    %307 = arith.mulf %298, %306 : vector<1x32xf32>
    %308 = arith.addf %305, %307 : vector<1x32xf32>
    %309 = math.tanh %308 : vector<1x32xf32>
    %310 = arith.subf %264, %309 : vector<1x32xf32>
    %311 = arith.mulf %304, %310 : vector<1x32xf32>
    %312 = arith.addf %309, %311 : vector<1x32xf32>
    %cst_70 = arith.constant dense<0.000000e+00> : vector<1x128xf32>
    %313 = tpu.matmul %312, %15, %cst_70 {dimension_numbers = #tpu.dot_dimension_numbers<[1], [0], [0], [1], [0, 0, 1, 1], [], []>} : vector<1x32xf32>, vector<32x128xf32>, vector<1x128xf32> -> vector<1x128xf32>
    %314 = arith.addf %313, %21 : vector<1x128xf32>
    %c5 = arith.constant 5 : index
    %c0_71 = arith.constant 0 : index
    %315 = vector.load %arg6[%c5, %c0_71] : memref<8x32xf32, #tpu.memory_space<vmem>>, vector<1x32xf32>
    tpu.vector_store %arg6[%c5, %c0_71], %312 {strides = array<i32>} : memref<8x32xf32, #tpu.memory_space<vmem>>, vector<1x32xf32>,
    %316 = vector.extract_strided_slice %24 {offsets = [6, 0], sizes = [1, 128], strides = [1, 1]} : vector<8x128xf32> to vector<1x128xf32>
    %317 = arith.addf %316, %290 : vector<1x128xf32>
    %318 = vector.extract_strided_slice %317 {offsets = [0, 0], sizes = [1, 32], strides = [1, 1]} : vector<1x128xf32> to vector<1x32xf32>
    %319 = arith.negf %318 : vector<1x32xf32>
    %320 = math.exp %319 : vector<1x32xf32>
    %cst_72 = arith.constant 1.000000e+00 : f32
    %321 = vector.broadcast %cst_72 : f32 to vector<1x32xf32>
    %322 = arith.addf %321, %320 : vector<1x32xf32>
    %323 = arith.divf %321, %322 : vector<1x32xf32>
    %324 = vector.extract_strided_slice %317 {offsets = [0, 32], sizes = [1, 32], strides = [1, 1]} : vector<1x128xf32> to vector<1x32xf32>
    %325 = arith.negf %324 : vector<1x32xf32>
    %326 = math.exp %325 : vector<1x32xf32>
    %cst_73 = arith.constant 1.000000e+00 : f32
    %327 = vector.broadcast %cst_73 : f32 to vector<1x32xf32>
    %328 = arith.addf %327, %326 : vector<1x32xf32>
    %329 = arith.divf %327, %328 : vector<1x32xf32>
    %330 = vector.extract_strided_slice %317 {offsets = [0, 64], sizes = [1, 32], strides = [1, 1]} : vector<1x128xf32> to vector<1x32xf32>
    %331 = vector.extract_strided_slice %317 {offsets = [0, 96], sizes = [1, 32], strides = [1, 1]} : vector<1x128xf32> to vector<1x32xf32>
    %332 = arith.mulf %323, %331 : vector<1x32xf32>
    %333 = arith.addf %330, %332 : vector<1x32xf32>
    %334 = math.tanh %333 : vector<1x32xf32>
    %335 = arith.subf %289, %334 : vector<1x32xf32>
    %336 = arith.mulf %329, %335 : vector<1x32xf32>
    %337 = arith.addf %334, %336 : vector<1x32xf32>
    %cst_74 = arith.constant dense<0.000000e+00> : vector<1x128xf32>
    %338 = tpu.matmul %337, %13, %cst_74 {dimension_numbers = #tpu.dot_dimension_numbers<[1], [0], [0], [1], [0, 0, 1, 1], [], []>} : vector<1x32xf32>, vector<32x128xf32>, vector<1x128xf32> -> vector<1x128xf32>
    %cst_75 = arith.constant dense<0.000000e+00> : vector<1x128xf32>
    %339 = tpu.matmul %337, %11, %cst_75 {dimension_numbers = #tpu.dot_dimension_numbers<[1], [0], [0], [1], [0, 0, 1, 1], [], []>} : vector<1x32xf32>, vector<32x128xf32>, vector<1x128xf32> -> vector<1x128xf32>
    %340 = arith.addf %339, %314 : vector<1x128xf32>
    %341 = vector.extract_strided_slice %340 {offsets = [0, 0], sizes = [1, 32], strides = [1, 1]} : vector<1x128xf32> to vector<1x32xf32>
    %342 = arith.negf %341 : vector<1x32xf32>
    %343 = math.exp %342 : vector<1x32xf32>
    %cst_76 = arith.constant 1.000000e+00 : f32
    %344 = vector.broadcast %cst_76 : f32 to vector<1x32xf32>
    %345 = arith.addf %344, %343 : vector<1x32xf32>
    %346 = arith.divf %344, %345 : vector<1x32xf32>
    %347 = vector.extract_strided_slice %340 {offsets = [0, 32], sizes = [1, 32], strides = [1, 1]} : vector<1x128xf32> to vector<1x32xf32>
    %348 = arith.negf %347 : vector<1x32xf32>
    %349 = math.exp %348 : vector<1x32xf32>
    %cst_77 = arith.constant 1.000000e+00 : f32
    %350 = vector.broadcast %cst_77 : f32 to vector<1x32xf32>
    %351 = arith.addf %350, %349 : vector<1x32xf32>
    %352 = arith.divf %350, %351 : vector<1x32xf32>
    %353 = vector.extract_strided_slice %340 {offsets = [0, 64], sizes = [1, 32], strides = [1, 1]} : vector<1x128xf32> to vector<1x32xf32>
    %354 = vector.extract_strided_slice %340 {offsets = [0, 96], sizes = [1, 32], strides = [1, 1]} : vector<1x128xf32> to vector<1x32xf32>
    %355 = arith.mulf %346, %354 : vector<1x32xf32>
    %356 = arith.addf %353, %355 : vector<1x32xf32>
    %357 = math.tanh %356 : vector<1x32xf32>
    %358 = arith.subf %312, %357 : vector<1x32xf32>
    %359 = arith.mulf %352, %358 : vector<1x32xf32>
    %360 = arith.addf %357, %359 : vector<1x32xf32>
    %cst_78 = arith.constant dense<0.000000e+00> : vector<1x128xf32>
    %361 = tpu.matmul %360, %15, %cst_78 {dimension_numbers = #tpu.dot_dimension_numbers<[1], [0], [0], [1], [0, 0, 1, 1], [], []>} : vector<1x32xf32>, vector<32x128xf32>, vector<1x128xf32> -> vector<1x128xf32>
    %362 = arith.addf %361, %21 : vector<1x128xf32>
    %c6 = arith.constant 6 : index
    %c0_79 = arith.constant 0 : index
    %363 = vector.load %arg6[%c6, %c0_79] : memref<8x32xf32, #tpu.memory_space<vmem>>, vector<1x32xf32>
    tpu.vector_store %arg6[%c6, %c0_79], %360 {strides = array<i32>} : memref<8x32xf32, #tpu.memory_space<vmem>>, vector<1x32xf32>,
    %364 = vector.extract_strided_slice %24 {offsets = [7, 0], sizes = [1, 128], strides = [1, 1]} : vector<8x128xf32> to vector<1x128xf32>
    %365 = arith.addf %364, %338 : vector<1x128xf32>
    %366 = vector.extract_strided_slice %365 {offsets = [0, 0], sizes = [1, 32], strides = [1, 1]} : vector<1x128xf32> to vector<1x32xf32>
    %367 = arith.negf %366 : vector<1x32xf32>
    %368 = math.exp %367 : vector<1x32xf32>
    %cst_80 = arith.constant 1.000000e+00 : f32
    %369 = vector.broadcast %cst_80 : f32 to vector<1x32xf32>
    %370 = arith.addf %369, %368 : vector<1x32xf32>
    %371 = arith.divf %369, %370 : vector<1x32xf32>
    %372 = vector.extract_strided_slice %365 {offsets = [0, 32], sizes = [1, 32], strides = [1, 1]} : vector<1x128xf32> to vector<1x32xf32>
    %373 = arith.negf %372 : vector<1x32xf32>
    %374 = math.exp %373 : vector<1x32xf32>
    %cst_81 = arith.constant 1.000000e+00 : f32
    %375 = vector.broadcast %cst_81 : f32 to vector<1x32xf32>
    %376 = arith.addf %375, %374 : vector<1x32xf32>
    %377 = arith.divf %375, %376 : vector<1x32xf32>
    %378 = vector.extract_strided_slice %365 {offsets = [0, 64], sizes = [1, 32], strides = [1, 1]} : vector<1x128xf32> to vector<1x32xf32>
    %379 = vector.extract_strided_slice %365 {offsets = [0, 96], sizes = [1, 32], strides = [1, 1]} : vector<1x128xf32> to vector<1x32xf32>
    %380 = arith.mulf %371, %379 : vector<1x32xf32>
    %381 = arith.addf %378, %380 : vector<1x32xf32>
    %382 = math.tanh %381 : vector<1x32xf32>
    %383 = arith.subf %337, %382 : vector<1x32xf32>
    %384 = arith.mulf %377, %383 : vector<1x32xf32>
    %385 = arith.addf %382, %384 : vector<1x32xf32>
    %cst_82 = arith.constant dense<0.000000e+00> : vector<1x128xf32>
    %386 = tpu.matmul %385, %11, %cst_82 {dimension_numbers = #tpu.dot_dimension_numbers<[1], [0], [0], [1], [0, 0, 1, 1], [], []>} : vector<1x32xf32>, vector<32x128xf32>, vector<1x128xf32> -> vector<1x128xf32>
    %387 = arith.addf %386, %362 : vector<1x128xf32>
    %388 = vector.extract_strided_slice %387 {offsets = [0, 0], sizes = [1, 32], strides = [1, 1]} : vector<1x128xf32> to vector<1x32xf32>
    %389 = arith.negf %388 : vector<1x32xf32>
    %390 = math.exp %389 : vector<1x32xf32>
    %cst_83 = arith.constant 1.000000e+00 : f32
    %391 = vector.broadcast %cst_83 : f32 to vector<1x32xf32>
    %392 = arith.addf %391, %390 : vector<1x32xf32>
    %393 = arith.divf %391, %392 : vector<1x32xf32>
    %394 = vector.extract_strided_slice %387 {offsets = [0, 32], sizes = [1, 32], strides = [1, 1]} : vector<1x128xf32> to vector<1x32xf32>
    %395 = arith.negf %394 : vector<1x32xf32>
    %396 = math.exp %395 : vector<1x32xf32>
    %cst_84 = arith.constant 1.000000e+00 : f32
    %397 = vector.broadcast %cst_84 : f32 to vector<1x32xf32>
    %398 = arith.addf %397, %396 : vector<1x32xf32>
    %399 = arith.divf %397, %398 : vector<1x32xf32>
    %400 = vector.extract_strided_slice %387 {offsets = [0, 64], sizes = [1, 32], strides = [1, 1]} : vector<1x128xf32> to vector<1x32xf32>
    %401 = vector.extract_strided_slice %387 {offsets = [0, 96], sizes = [1, 32], strides = [1, 1]} : vector<1x128xf32> to vector<1x32xf32>
    %402 = arith.mulf %393, %401 : vector<1x32xf32>
    %403 = arith.addf %400, %402 : vector<1x32xf32>
    %404 = math.tanh %403 : vector<1x32xf32>
    %405 = arith.subf %360, %404 : vector<1x32xf32>
    %406 = arith.mulf %399, %405 : vector<1x32xf32>
    %407 = arith.addf %404, %406 : vector<1x32xf32>
    %c7 = arith.constant 7 : index
    %c0_85 = arith.constant 0 : index
    %408 = vector.load %arg6[%c7, %c0_85] : memref<8x32xf32, #tpu.memory_space<vmem>>, vector<1x32xf32>
    tpu.vector_store %arg6[%c7, %c0_85], %407 {strides = array<i32>} : memref<8x32xf32, #tpu.memory_space<vmem>>, vector<1x32xf32>,
    %c0_86 = arith.constant 0 : index
    %c0_87 = arith.constant 0 : index
    %409 = vector.load %arg7[%c0_86, %c0_87] : memref<2x32xf32, #tpu.memory_space<vmem>>, vector<1x32xf32>
    tpu.vector_store %arg7[%c0_86, %c0_87], %385 {strides = array<i32>} : memref<2x32xf32, #tpu.memory_space<vmem>>, vector<1x32xf32>,
    %c1_88 = arith.constant 1 : index
    %c0_89 = arith.constant 0 : index
    %410 = vector.load %arg7[%c1_88, %c0_89] : memref<2x32xf32, #tpu.memory_space<vmem>>, vector<1x32xf32>
    tpu.vector_store %arg7[%c1_88, %c0_89], %407 {strides = array<i32>} : memref<2x32xf32, #tpu.memory_space<vmem>>, vector<1x32xf32>,
    return
  }
  func.func @transform_0(%arg0: i32) -> (i32, i32) {
    %c0_i32 = arith.constant 0 : i32
    %c0_i32_0 = arith.constant 0 : i32
    %c0_i32_1 = arith.constant 0 : i32
    return %c0_i32, %c0_i32_0 : i32, i32
  }
  func.func @transform_1(%arg0: i32) -> (i32, i32) {
    %c0_i32 = arith.constant 0 : i32
    %c0_i32_0 = arith.constant 0 : i32
    %c0_i32_1 = arith.constant 0 : i32
    return %c0_i32, %c0_i32_0 : i32, i32
  }
  func.func @transform_2(%arg0: i32) -> (i32, i32, i32) {
    %c0_i32 = arith.constant 0 : i32
    %c0_i32_0 = arith.constant 0 : i32
    %c0_i32_1 = arith.constant 0 : i32
    %c0_i32_2 = arith.constant 0 : i32
    return %c0_i32, %c0_i32_0, %c0_i32_1 : i32, i32, i32
  }
  func.func @transform_3(%arg0: i32) -> (i32, i32, i32) {
    %c0_i32 = arith.constant 0 : i32
    %c0_i32_0 = arith.constant 0 : i32
    %c0_i32_1 = arith.constant 0 : i32
    %c0_i32_2 = arith.constant 0 : i32
    return %c0_i32, %c0_i32_0, %c0_i32_1 : i32, i32, i32
  }
  func.func @transform_4(%arg0: i32) -> (i32, i32) {
    %c0_i32 = arith.constant 0 : i32
    %c0_i32_0 = arith.constant 0 : i32
    %c0_i32_1 = arith.constant 0 : i32
    return %c0_i32, %c0_i32_0 : i32, i32
  }
  func.func @transform_5(%arg0: i32) -> (i32, i32) {
    %c0_i32 = arith.constant 0 : i32
    %c0_i32_0 = arith.constant 0 : i32
    %c0_i32_1 = arith.constant 0 : i32
    return %c0_i32, %c0_i32_0 : i32, i32
  }
  func.func @transform_6(%arg0: i32) -> (i32, i32) {
    %c0_i32 = arith.constant 0 : i32
    %c0_i32_0 = arith.constant 0 : i32
    %c0_i32_1 = arith.constant 0 : i32
    return %c0_i32, %c0_i32_0 : i32, i32
  }
}

</mosaic_0001>

<bundles_post_ra>
// kernel: tpu_custom_call.1
= control target key start
LH: loop header
LB: loop body
LE: loop exit
PB: predicated region body
PF: predicated region fallthrough
CT: control target
= control target key end

     0   :  { %12 = vsyncpa [#allocation3], 0  ;;  %s3655_s0 = inlined_call_operand.vmem [shape: s32[8,1], index: 0, kind: input, shape index: {}]   ;;  %s3656_s1 = inlined_call_operand.vmem [shape: f32[50,32], index: 1, kind: input, shape index: {}]   ;;  %s3657_s2 = inlined_call_operand.vmem [shape: f32[2,32,128], index: 2, kind: input, shape index: {}]   ;;  %s3658_s3 = inlined_call_operand.hbm [shape: f32[2,32,128], index: 3, kind: input, shape index: {}]   ;;  %s3659_s4 = inlined_call_operand.vmem [shape: f32[2,128], index: 4, kind: input, shape index: {}]   ;;  %s3660_s5 = inlined_call_operand.hbm [shape: f32[8,32], index: 5, kind: output, shape index: {0}]   ;;  %s3661_s6 = inlined_call_operand.hbm [shape: f32[2,32], index: 6, kind: output, shape index: {1}]  }
   0x1   :  { %13 = vsyncpa [#allocation4], 0 }
   0x2   :  { %14 = vsyncpa [#allocation7], 0  ;;  %s3202_s21 = smov [#allocation2]   ;;  %s3130_s25 = scalar_lea.hbm %s3658_s3, 1024 }
   0x3   :  { %s26_s22 = sshll.u32 %s3202_s21, 4  ;;  %p3131_p0 = scmp.ne.s32.totalorder %s3658_s3, %s3130_s25  ;;  %s27_s22 = int_to_ptr.vmem [resolvable:$true] %s26_s22 }
   0x4   :  { %p3134_p1 = scmp.lt.u32.totalorder %s3130_s25, %s3658_s3 }
   0x6   :  { %p3136_p2 = pnand %p3134_p1, %p3131_p0 }
   0x8   :  { %3139 = shalt.err (!%p3136_p2)
}
   0x9   :  { %s3140_s30 = scalar_lea.vmem %s27_s22, 1024  ;;  %p3145_p4 = scmp.lt.s32.totalorder %s27_s22, %s27_s22 }
   0xa   :  { %p3141_p3 = scmp.ne.s32.totalorder %s27_s22, %s3140_s30  ;;  %p3146_p5 = scmp.lt.s32.totalorder %s3140_s30, %s3140_s30 }
   0xc   :  { %p3147_p6 = por %p3146_p5, %p3145_p4 }
   0xe   :  { %p3148_p7 = pnand %p3147_p6, %p3141_p3 }
  0x10   :  { %3151 = shalt.err (!%p3148_p7)
}
  0x11   :  { %s3203_s7 = smov 128   ;;  %s3204_s8 = smov 8  }
  0x12   :  { %32 = dma.hbm_to_vmem [thread:$0]  %s3658_s3, 1024, %s27_s22, [#allocation3], %s3203_s7, %s3203_s7, %s3204_s8  }
  0x13   :  { %3196 = dma.done.wait [#allocation3], 1024  }
  0x14   :  { %3197 = vsyncadd [#allocation3], 4294966272  ;;  %v3205_v0 = vmov 0   ;;  %v3206_v1 = vmov 0.0|0.0   ;;  %v38_v2 = vld [vmem:[%s3655_s0] sm:$0xff]  ;;  %v48_v4 = vld [vmem:[%s3656_s1 + $0x8] sm:$0xff]  ;;  %v39_v14 = vlaneseq }
  0x15   :  { %3032 = vset.pattern.permute.xlu0 %v3205_v0  ;;  %2852 = vmatprep.subr.bf16.mxu0 %v3206_v1  ;;  %v47_v3 = vld [vmem:[%s3656_s1] sm:$0xff]  ;;  %v49_v6 = vld [vmem:[%s3656_s1 + $0x10] sm:$0xff]  ;;  %v50_v7 = vld [vmem:[%s3656_s1 + $0x18] sm:$0xff]  ;;  %vm3207_vm0 = vmmov 0   ;;  %v3208_v8 = vmov 0.0   ;;  %vm58_vm1 = vcmask 1041408  }
  0x16   :  { %2867 = vmatprep.subr.bf16.mxu1 %v3206_v1  ;;  %42 = vperm.xlu0 %3032, %v38_v2   ;;  %v2853_v5 = vpack.c.bf16 %v48_v4, %v47_v3  ;;  %v2856_v9 = vpack.c.bf16 %v50_v7, %v49_v6  ;;  %v51_v10 = vld [vmem:[%s3656_s1 + $0x20] sm:$0xff]  ;;  %v52_v11 = vld [vmem:[%s3656_s1 + $0x28] sm:$0xff]  ;;  %v53_v13 = vld [vmem:[%s3656_s1 + $0x30] sm:$0x3]  ;;  %v40_v15 = vand.u32 127, %v39_v14  ;;  %vm54_vm2 = vcmask 408576  }
  0x17   :  { %2596 = vmatprep.mubr.msk.f32.mxu0 %vm3207_vm0, %v3208_v8  ;;  %2618 = vmatprep.mubr.msk.f32.mxu1 %vm3207_vm0, %v3208_v8  ;;  %v2859_v12 = vpack.c.bf16 %v52_v11, %v51_v10  ;;  %v132_v16 = vld [vmem:[%s3657_s2] sm:$0xff]  ;;  %v133_v17 = vld [vmem:[%s3657_s2 + $0x8] sm:$0xff]  ;;  %v134_v20 = vld [vmem:[%s3657_s2 + $0x10] sm:$0xff]  ;;  %vm156_vm4 = vcmask 261120   ;;  %s3209_s10 = smov 32   ;;  %s3210_s11 = smov 64  }
  0x18   :  { %2854 = vmatpush3.bf16.msra.mxu0 %v2853_v5  ;;  %v2862_v19 = vpack.c.bf16 %v133_v17, %v132_v16  ;;  %v135_v21 = vld [vmem:[%s3657_s2 + $0x18] sm:$0xff]  ;;  %v2419_v26 = vld [vmem:[%s3659_s4] ss:$0 sm:$0xff]  ;;  %s3211_s12 = smov 96   ;;  %v141_v40 = vld [vmem:[#allocation2] sm:$0xff]  ;;  %vm508_vm5 = vcmask 253952  }
  0x19   :  { %2855 = vmatprep.subr.bf16.mxu0 %v3206_v1  ;;  %v2865_v23 = vpack.c.bf16 %v135_v21, %v134_v20  ;;  %v142_v41 = vld [vmem:[#allocation2 + $0x8] sm:$0xff]  ;;  %v2415_v42 = vld [vmem:[%s3657_s2 + $0x20] sm:$0xff]  ;;  %v2416_v44 = vld [vmem:[%s3657_s2 + $0x28] sm:$0xff]  ;;  %vm2380_vm6 = vcmask 261127   ;;  %s3213_s23 = smov [#allocation6]  }
  0x1a   :  { %v3329_v43 = vpack.c.bf16 %v142_v41, %v141_v40  ;;  %v143_v45 = vld [vmem:[#allocation2 + $0x10] sm:$0xff]  ;;  %v144_v46 = vld [vmem:[#allocation2 + $0x18] sm:$0xff]  ;;  %v3334_v47 = vpack.c.bf16 %v2416_v44, %v2415_v42  ;;  %v2417_v48 = vld [vmem:[%s3657_s2 + $0x30] sm:$0xff]  ;;  %s2399_s24 = sshll.u32 %s3213_s23, 4  ;;  %s2400_s24 = int_to_ptr.vmem [resolvable:$true] %s2399_s24 }
  0x1b   :  { %v2418_v49 = vld [vmem:[%s3657_s2 + $0x38] sm:$0xff]  ;;  %v3343_v50 = vpack.c.bf16 %v144_v46, %v143_v45  ;;  %v3369_v57 = vld [vmem:[%s3659_s4 + $0x1] sm:$0x1] }
  0x1c   :  { %2857 = vmatpush3.bf16.msra.mxu0 %v2856_v9  ;;  %2869 = vmatpush3.bf16.msra.mxu1 %v3329_v43  ;;  %v3347_v51 = vpack.c.bf16 %v2418_v49, %v2417_v48 }
  0x1d   :  { %2858 = vmatprep.subr.bf16.mxu0 %v3206_v1  ;;  %2870 = vmatprep.subr.bf16.mxu1 %v3206_v1 }
  0x20   :  { %2860 = vmatpush3.bf16.msra.mxu0 %v2859_v12  ;;  %2872 = vmatpush3.bf16.msra.mxu1 %v3343_v50 }
  0x21   :  { %2594 = vmatprep.subr.mxu0 %v3208_v8  ;;  %2879 = vmatprep.subr.bf16.mxu1 %v3206_v1 }
  0x24   :  { %2595 = vmatpush3.msk.msra.mxu0 %vm58_vm1, %v53_v13 }
  0x25   :  { %2861 = vmatprep.subr.bf16.mxu0 %v3206_v1 }
  0x95   :  { %v43_v18 = vpop.permute.xlu0 %42 }
  0x96   :  { %vm44_vm3 = vcmp.eq.s32.totalorder %v40_v15, %v43_v18 }
  0x97   :  { %v2412_v22 = vsel %vm44_vm3, 1.0, %v3208_v8 }
  0x98   :  { %2597 = vmatmul.mubr.msk.f32.vlgmr.msra.gmra.mrb[0].mxu0 %vm54_vm2, %v2412_v22 }
  0x99   :  { %2863 = vmatpush3.bf16.msra.mxu0 %v2862_v19  ;;  %2607 = vmatprep.mubr.msk.f32.mxu0 %vm3207_vm0, %v3208_v8 }
  0x9a   :  { %2864 = vmatprep.subr.bf16.mxu0 %v3206_v1 }
  0x9d   :  { %2866 = vmatpush3.bf16.msra.mxu0 %v2865_v23 }
  0x9e   :  { %2873 = vmatprep.subr.bf16.mxu0 %v3206_v1 }
 0x16b   :  { %v128_v24 = vpop.f32.mrb[0].mxu0 }
 0x16c   :  { %v2598_v25 = vpop.f32.mrb[1].mxu0  ;;  %2608 = vmatmul.mubr.msk.f32.vlgmr.msra.gmra.mrb[2].mxu0 %vm156_vm4, %v128_v24 }
 0x16d   :  { %2629 = vmatprep.mubr.msk.f32.mxu0 %vm3207_vm0, %v3208_v8  ;;  %2875 = vmatpush3.bf16.msra.mxu0 %v3334_v47 }
 0x16e   :  { %2876 = vmatprep.subr.bf16.mxu0 %v3206_v1 }
 0x171   :  { %2878 = vmatpush3.bf16.msra.mxu0 %v3347_v51 }
 0x172   :  { %2885 = vmatprep.subr.bf16.mxu0 %v3206_v1 }
 0x23f   :  { %v226_v27 = vpop.f32.mrb[2].mxu0 }
 0x240   :  { %v3318_v28 = vadd.f32 %v2419_v26, %v226_v27  ;;  %v2609_v29 = vpop.f32.mrb[3].mxu0  ;;  %v146_v26 = vld [vmem:[#allocation2 + $0x20] sm:$0xff]  ;;  %v147_v27 = vld [vmem:[#allocation2 + $0x28] sm:$0xff] }
 0x241   :  { %v148_v29 = vld [vmem:[#allocation2 + $0x30] sm:$0xff] }
 0x242   :  { %238 = vrot.lane.b32.xlu0 %v3318_v28, %s3209_s10  ;;  %v2421_v30 = vmul.f32 -1.442695, %v3318_v28 }
 0x244   :  { %3033 = vpow2.f32 %v2421_v30 }
 0x24e   :  { %v3034_v31 = vpop.eup %3033 }
 0x24f   :  { %v234_v32 = vadd.f32 1.0, %v3034_v31  ;;  %v3379_v31 = vpack.c.bf16 %v147_v27, %v146_v26 }
 0x251   :  { %3035 = vrcp.f32 %v234_v32  ;;  %v149_v32 = vld [vmem:[#allocation2 + $0x38] sm:$0xff] }
 0x25b   :  { %v3036_v33 = vpop.eup %3035 }
 0x2b4   :  { %v239_v34 = vpop.permute.xlu0 %238 }
 0x2b5   :  { %v241_v35 = vmul.f32 %v3036_v33, %v239_v34 }
 0x2b7   :  { %243 = vrot.lane.b32.xlu1 %v241_v35, %s3210_s11 }
 0x329   :  { %v244_v36 = vpop.permute.xlu1 %243 }
 0x32a   :  { %v246_v37 = vadd.f32 %v244_v36, %v3318_v28 }
 0x32c   :  { %3037 = vtanh.f32 %v246_v37 }
 0x336   :  { %v3038_v38 = vpop.eup %3037 }
 0x337   :  { %v248_v39 = vsub.f32 0.0, %v3038_v38 }
 0x339   :  { %250 = vrot.lane.b32.xlu1 %v248_v39, %s3211_s12 }
 0x3ab   :  { %v251_v52 = vpop.permute.xlu1 %250 }
 0x3ac   :  { %v253_v53 = vmul.f32 %v3036_v33, %v251_v52  ;;  %v3383_v33 = vpack.c.bf16 %v149_v32, %v148_v29 }
 0x3ae   :  { %255 = vrot.lane.b32.xlu0 %v253_v53, %s3209_s10 }
 0x420   :  { %v256_v54 = vpop.permute.xlu0 %255 }
 0x421   :  { %v258_v55 = vadd.f32 %v3038_v38, %v256_v54 }
 0x423   :  { %260 = vrot.lane.b32.xlu1 %v258_v55, %s3210_s11 }
 0x495   :  { %v261_v56 = vpop.permute.xlu1 %260 }
 0x496   :  { %2619 = vmatmul.mubr.msk.f32.vlgmr.msra.gmra.mrb[0].mxu1 %vm156_vm4, %v261_v56  ;;  %2630 = vmatmul.mubr.msk.f32.vlgmr.msra.gmra.mrb[4].mxu0 %vm156_vm4, %v261_v56 }
 0x497   :  { %2640 = vmatprep.mubr.msk.f32.mxu1 %vm3207_vm0, %v3208_v8  ;;  %2887 = vmatpush3.bf16.msra.mxu0 %v3329_v43 }
 0x498   :  { %2888 = vmatprep.subr.bf16.mxu0 %v3206_v1  ;;  %2651 = vmatprep.mubr.msk.f32.mxu0 %vm3207_vm0, %v3208_v8 }
 0x499   :  { %2881 = vmatpush3.bf16.msra.mxu1 %v3379_v31 }
 0x49a   :  { %2882 = vmatprep.subr.bf16.mxu1 %v3206_v1 }
 0x49b   :  { %2890 = vmatpush3.bf16.msra.mxu0 %v3343_v50 }
 0x49c   :  { %2897 = vmatprep.subr.bf16.mxu0 %v3206_v1 }
 0x49d   :  { %2884 = vmatpush3.bf16.msra.mxu1 %v3383_v33 }
 0x49e   :  { %2891 = vmatprep.subr.bf16.mxu1 %v3206_v1 }
 0x569   :  { %v330_v58 = vpop.f32.mrb[0].mxu1  ;;  %v400_v59 = vpop.f32.mrb[4].mxu0 }
 0x56a   :  { %v511_v60 = vrot.slane %v330_v58, 7  ;;  %v401_v61 = vadd.f32 %v400_v59, %v3369_v57  ;;  %v2620_v62 = vpop.f32.mrb[1].mxu1  ;;  %v2631_v63 = vpop.f32.mrb[5].mxu0 }
 0x56c   :  { %v513_v0 = vadd.f32 %v511_v60, %v3318_v28  ;;  %411 = vrot.lane.b32.xlu0 %v401_v61, %s3209_s10  ;;  %v2424_v2 = vmul.f32 -1.442695, %v401_v61 }
 0x56e   :  { %521 = vrot.lane.b32.xlu1 %v513_v0, %s3209_s10  ;;  %v2426_v3 = vmul.f32 -1.442695, %v513_v0  ;;  %3039 = vpow2.f32 %v2424_v2 }
 0x570   :  { %3041 = vpow2.f32 %v2426_v3 }
 0x578   :  { %v3040_v4 = vpop.eup %3039 }
 0x579   :  { %v407_v6 = vadd.f32 1.0, %v3040_v4 }
 0x57a   :  { %v3042_v5 = vpop.eup %3041 }
 0x57b   :  { %v517_v7 = vadd.f32 1.0, %v3042_v5  ;;  %3043 = vrcp.f32 %v407_v6 }
 0x57d   :  { %3045 = vrcp.f32 %v517_v7 }
 0x585   :  { %v3044_v9 = vpop.eup %3043 }
 0x587   :  { %v3046_v12 = vpop.eup %3045 }
 0x5de   :  { %v412_v10 = vpop.permute.xlu0 %411 }
 0x5df   :  { %v414_v11 = vmul.f32 %v3044_v9, %v412_v10 }
 0x5e0   :  { %v522_v13 = vpop.permute.xlu1 %521 }
 0x5e1   :  { %v524_v14 = vmul.f32 %v3046_v12, %v522_v13  ;;  %416 = vrot.lane.b32.xlu0 %v414_v11, %s3210_s11 }
 0x5e3   :  { %526 = vrot.lane.b32.xlu1 %v524_v14, %s3210_s11 }
 0x653   :  { %v417_v15 = vpop.permute.xlu0 %416 }
 0x654   :  { %v419_v16 = vadd.f32 %v417_v15, %v401_v61 }
 0x655   :  { %v527_v17 = vpop.permute.xlu1 %526 }
 0x656   :  { %3047 = vtanh.f32 %v419_v16  ;;  %v529_v18 = vadd.f32 %v527_v17, %v513_v0 }
 0x658   :  { %3049 = vtanh.f32 %v529_v18 }
 0x660   :  { %v3048_v19 = vpop.eup %3047 }
 0x661   :  { %v421_v20 = vsub.f32 0.0, %v3048_v19 }
 0x662   :  { %v3050_v21 = vpop.eup %3049 }
 0x663   :  { %423 = vrot.lane.b32.xlu0 %v421_v20, %s3211_s12  ;;  %v532_v22 = vrot.slane %v3050_v21, 1 }
 0x665   :  { %v534_v23 = vsub.f32 %v258_v55, %v532_v22 }
 0x667   :  { %v536_v24 = vrot.slane %v534_v23, 7 }
 0x669   :  { %537 = vrot.lane.b32.xlu1 %v536_v24, %s3211_s12 }
 0x6d5   :  { %v424_v25 = vpop.permute.xlu0 %423 }
 0x6d6   :  { %v426_v30 = vmul.f32 %v3044_v9, %v424_v25 }
 0x6d8   :  { %428 = vrot.lane.b32.xlu0 %v426_v30, %s3209_s10 }
 0x6db   :  { %v538_v34 = vpop.permute.xlu1 %537 }
 0x6dc   :  { %v540_v35 = vmul.f32 %v3046_v12, %v538_v34 }
 0x6de   :  { %542 = vrot.lane.b32.xlu1 %v540_v35, %s3209_s10 }
 0x74a   :  { %v429_v36 = vpop.permute.xlu0 %428 }
 0x74b   :  { %v3389_v37 = vadd.f32 %v3048_v19, %v429_v36 }
 0x74d   :  { %433 = vrot.lane.b32.xlu0 %v3389_v37, %s3210_s11 }
 0x750   :  { %v543_v38 = vpop.permute.xlu1 %542 }
 0x751   :  { %v3393_v39 = vadd.f32 %v3050_v21, %v543_v38 }
 0x753   :  { %v547_v40 = vrot.slane %v3393_v39, 1 }
 0x755   :  { %548 = vrot.lane.b32.xlu1 %v547_v40, %s3210_s11 }
 0x7bf   :  { %v434_v41 = vpop.permute.xlu0 %433 }
 0x7c0   :  { %509 = vst.msk [vmem:[#allocation5] sm:$0x1] %vm508_vm5, %v434_v41  ;;  %2641 = vmatmul.mubr.msk.f32.vlgmr.msra.gmra.mrb[2].mxu1 %vm156_vm4, %v434_v41 }
 0x7c1   :  { %2893 = vmatpush3.bf16.msra.mxu1 %v3334_v47  ;;  %2662 = vmatprep.mubr.msk.f32.mxu1 %vm3207_vm0, %v3208_v8 }
 0x7c2   :  { %2894 = vmatprep.subr.bf16.mxu1 %v3206_v1 }
 0x7c5   :  { %2896 = vmatpush3.bf16.msra.mxu1 %v3347_v51 }
 0x7c6   :  { %2903 = vmatprep.subr.bf16.mxu1 %v3206_v1 }
 0x7c7   :  { %v549_v42 = vpop.permute.xlu1 %548 }
 0x7c8   :  { %2652 = vmatmul.mubr.msk.f32.vlgmr.msra.gmra.mrb[6].mxu0 %vm156_vm4, %v549_v42  ;;  %2663 = vmatmul.mubr.msk.f32.vlgmr.msra.gmra.mrb[2].mxu1 %vm156_vm4, %v549_v42 }
 0x7c9   :  { %2899 = vmatpush3.bf16.msra.mxu0 %v3379_v31  ;;  %2673 = vmatprep.mubr.msk.f32.mxu0 %vm3207_vm0, %v3208_v8 }
 0x7ca   :  { %2900 = vmatprep.subr.bf16.mxu0 %v3206_v1  ;;  %2905 = vmatpush3.bf16.msra.mxu1 %v3329_v43 }
 0x7cb   :  { %2906 = vmatprep.subr.bf16.mxu1 %v3206_v1  ;;  %2684 = vmatprep.mubr.msk.f32.mxu1 %vm3207_vm0, %v3208_v8 }
 0x7cd   :  { %2902 = vmatpush3.bf16.msra.mxu0 %v3383_v33 }
 0x7ce   :  { %2909 = vmatprep.subr.bf16.mxu0 %v3206_v1  ;;  %2908 = vmatpush3.bf16.msra.mxu1 %v3343_v50 }
 0x7cf   :  { %2915 = vmatprep.subr.bf16.mxu1 %v3206_v1 }
 0x89b   :  { %v618_v44 = vpop.f32.mrb[6].mxu0  ;;  %v688_v45 = vpop.f32.mrb[2].mxu1 }
 0x89c   :  { %v798_v46 = vrot.slane %v618_v44, 6  ;;  %v2999_v48 = vadd.f32 %v688_v45, %v3369_v57  ;;  %v2653_v49 = vpop.f32.mrb[7].mxu0  ;;  %v2664_v52 = vpop.f32.mrb[3].mxu1 }
 0x89e   :  { %v800_v53 = vadd.f32 %v798_v46, %v3318_v28  ;;  %699 = vrot.lane.b32.xlu0 %v2999_v48, %s3209_s10  ;;  %v2429_v54 = vmul.f32 -1.442695, %v2999_v48 }
 0x8a0   :  { %808 = vrot.lane.b32.xlu1 %v800_v53, %s3209_s10  ;;  %v2431_v55 = vmul.f32 -1.442695, %v800_v53  ;;  %3051 = vpow2.f32 %v2429_v54 }
 0x8a2   :  { %3053 = vpow2.f32 %v2431_v55 }
 0x8aa   :  { %v3052_v56 = vpop.eup %3051 }
 0x8ab   :  { %v695_v59 = vadd.f32 1.0, %v3052_v56 }
 0x8ac   :  { %v3054_v58 = vpop.eup %3053 }
 0x8ad   :  { %v804_v60 = vadd.f32 1.0, %v3054_v58  ;;  %3055 = vrcp.f32 %v695_v59 }
 0x8af   :  { %3057 = vrcp.f32 %v804_v60 }
 0x8b7   :  { %v3056_v61 = vpop.eup %3055 }
 0x8b9   :  { %v3058_v0 = vpop.eup %3057 }
 0x910   :  { %v700_v62 = vpop.permute.xlu0 %699 }
 0x911   :  { %v702_v63 = vmul.f32 %v3056_v61, %v700_v62 }
 0x912   :  { %v809_v2 = vpop.permute.xlu1 %808 }
 0x913   :  { %v811_v3 = vmul.f32 %v3058_v0, %v809_v2  ;;  %704 = vrot.lane.b32.xlu0 %v702_v63, %s3210_s11 }
 0x915   :  { %813 = vrot.lane.b32.xlu1 %v811_v3, %s3210_s11 }
 0x985   :  { %v705_v4 = vpop.permute.xlu0 %704 }
 0x986   :  { %v707_v5 = vadd.f32 %v2999_v48, %v705_v4 }
 0x987   :  { %v814_v6 = vpop.permute.xlu1 %813 }
 0x988   :  { %3059 = vtanh.f32 %v707_v5  ;;  %v816_v7 = vadd.f32 %v814_v6, %v800_v53 }
 0x98a   :  { %3061 = vtanh.f32 %v816_v7 }
 0x992   :  { %v3060_v9 = vpop.eup %3059 }
 0x993   :  { %v709_v10 = vsub.f32 %v3389_v37, %v3060_v9 }
 0x994   :  { %v3062_v11 = vpop.eup %3061 }
 0x995   :  { %711 = vrot.lane.b32.xlu0 %v709_v10, %s3211_s12  ;;  %v819_v12 = vrot.slane %v3062_v11, 1 }
 0x997   :  { %v821_v13 = vsub.f32 %v3393_v39, %v819_v12 }
 0x999   :  { %v823_v14 = vrot.slane %v821_v13, 7 }
 0x99b   :  { %824 = vrot.lane.b32.xlu1 %v823_v14, %s3211_s12 }
 0xa07   :  { %v712_v15 = vpop.permute.xlu0 %711 }
 0xa08   :  { %v714_v16 = vmul.f32 %v3056_v61, %v712_v15 }
 0xa0a   :  { %716 = vrot.lane.b32.xlu0 %v714_v16, %s3209_s10 }
 0xa0d   :  { %v825_v17 = vpop.permute.xlu1 %824 }
 0xa0e   :  { %v827_v18 = vmul.f32 %v3058_v0, %v825_v17 }
 0xa10   :  { %829 = vrot.lane.b32.xlu1 %v827_v18, %s3209_s10 }
 0xa7c   :  { %v717_v19 = vpop.permute.xlu0 %716 }
 0xa7d   :  { %v3431_v20 = vadd.f32 %v3060_v9, %v717_v19 }
 0xa7f   :  { %721 = vrot.lane.b32.xlu0 %v3431_v20, %s3210_s11 }
 0xa82   :  { %v830_v21 = vpop.permute.xlu1 %829 }
 0xa83   :  { %v832_v22 = vadd.f32 %v3062_v11, %v830_v21 }
 0xa85   :  { %v834_v23 = vrot.slane %v832_v22, 2 }
 0xa87   :  { %835 = vrot.lane.b32.xlu1 %v834_v23, %s3210_s11 }
 0xaf1   :  { %v722_v24 = vpop.permute.xlu0 %721 }
 0xaf2   :  { %796 = vst.msk [vmem:[#allocation5 + $0x1] sm:$0x1] %vm508_vm5, %v722_v24  ;;  %2674 = vmatmul.mubr.msk.f32.vlgmr.msra.gmra.mrb[8].mxu0 %vm156_vm4, %v722_v24 }
 0xaf3   :  { %2911 = vmatpush3.bf16.msra.mxu0 %v3334_v47  ;;  %2695 = vmatprep.mubr.msk.f32.mxu0 %vm3207_vm0, %v3208_v8 }
 0xaf4   :  { %2912 = vmatprep.subr.bf16.mxu0 %v3206_v1 }
 0xaf7   :  { %2914 = vmatpush3.bf16.msra.mxu0 %v3347_v51 }
 0xaf8   :  { %2921 = vmatprep.subr.bf16.mxu0 %v3206_v1 }
 0xaf9   :  { %v836_v25 = vpop.permute.xlu1 %835 }
 0xafa   :  { %2685 = vmatmul.mubr.msk.f32.vlgmr.msra.gmra.mrb[4].mxu1 %vm156_vm4, %v836_v25  ;;  %2696 = vmatmul.mubr.msk.f32.vlgmr.msra.gmra.mrb[8].mxu0 %vm156_vm4, %v836_v25 }
 0xafb   :  { %2917 = vmatpush3.bf16.msra.mxu1 %v3379_v31  ;;  %2706 = vmatprep.mubr.msk.f32.mxu1 %vm3207_vm0, %v3208_v8 }
 0xafc   :  { %2918 = vmatprep.subr.bf16.mxu1 %v3206_v1  ;;  %2923 = vmatpush3.bf16.msra.mxu0 %v3329_v43 }
 0xafd   :  { %2924 = vmatprep.subr.bf16.mxu0 %v3206_v1  ;;  %2717 = vmatprep.mubr.msk.f32.mxu0 %vm3207_vm0, %v3208_v8 }
 0xaff   :  { %2920 = vmatpush3.bf16.msra.mxu1 %v3383_v33 }
 0xb00   :  { %2927 = vmatprep.subr.bf16.mxu1 %v3206_v1  ;;  %2926 = vmatpush3.bf16.msra.mxu0 %v3343_v50 }
 0xb01   :  { %2933 = vmatprep.subr.bf16.mxu0 %v3206_v1 }
 0xbcd   :  { %v905_v26 = vpop.f32.mrb[4].mxu1  ;;  %v975_v27 = vpop.f32.mrb[8].mxu0 }
 0xbce   :  { %v1085_v29 = vrot.slane %v905_v26, 5  ;;  %v3000_v30 = vadd.f32 %v975_v27, %v3369_v57  ;;  %v2686_v32 = vpop.f32.mrb[5].mxu1  ;;  %v2697_v34 = vpop.f32.mrb[9].mxu0 }
 0xbd0   :  { %v1087_v35 = vadd.f32 %v1085_v29, %v3318_v28  ;;  %986 = vrot.lane.b32.xlu0 %v3000_v30, %s3209_s10  ;;  %v2434_v36 = vmul.f32 -1.442695, %v3000_v30 }
 0xbd2   :  { %1095 = vrot.lane.b32.xlu1 %v1087_v35, %s3209_s10  ;;  %v2436_v37 = vmul.f32 -1.442695, %v1087_v35  ;;  %3063 = vpow2.f32 %v2434_v36 }
 0xbd4   :  { %3065 = vpow2.f32 %v2436_v37 }
 0xbdc   :  { %v3064_v38 = vpop.eup %3063 }
 0xbdd   :  { %v982_v40 = vadd.f32 1.0, %v3064_v38 }
 0xbde   :  { %v3066_v39 = vpop.eup %3065 }
 0xbdf   :  { %v1091_v41 = vadd.f32 1.0, %v3066_v39  ;;  %3067 = vrcp.f32 %v982_v40 }
 0xbe1   :  { %3069 = vrcp.f32 %v1091_v41 }
 0xbe9   :  { %v3068_v42 = vpop.eup %3067 }
 0xbeb   :  { %v3070_v46 = vpop.eup %3069 }
 0xc42   :  { %v987_v44 = vpop.permute.xlu0 %986 }
 0xc43   :  { %v989_v45 = vmul.f32 %v3068_v42, %v987_v44 }
 0xc44   :  { %v1096_v48 = vpop.permute.xlu1 %1095 }
 0xc45   :  { %v1098_v49 = vmul.f32 %v3070_v46, %v1096_v48  ;;  %991 = vrot.lane.b32.xlu0 %v989_v45, %s3210_s11 }
 0xc47   :  { %1100 = vrot.lane.b32.xlu1 %v1098_v49, %s3210_s11 }
 0xcb7   :  { %v992_v52 = vpop.permute.xlu0 %991 }
 0xcb8   :  { %v994_v53 = vadd.f32 %v3000_v30, %v992_v52 }
 0xcb9   :  { %v1101_v54 = vpop.permute.xlu1 %1100 }
 0xcba   :  { %3071 = vtanh.f32 %v994_v53  ;;  %v1103_v55 = vadd.f32 %v1101_v54, %v1087_v35 }
 0xcbc   :  { %3073 = vtanh.f32 %v1103_v55 }
 0xcc4   :  { %v3072_v56 = vpop.eup %3071 }
 0xcc5   :  { %v996_v58 = vsub.f32 %v3431_v20, %v3072_v56 }
 0xcc6   :  { %v3074_v59 = vpop.eup %3073 }
 0xcc7   :  { %998 = vrot.lane.b32.xlu0 %v996_v58, %s3211_s12  ;;  %v1106_v60 = vrot.slane %v3074_v59, 1 }
 0xcc9   :  { %v1108_v61 = vsub.f32 %v832_v22, %v1106_v60 }
 0xccb   :  { %v1110_v62 = vrot.slane %v1108_v61, 7 }
 0xccd   :  { %1111 = vrot.lane.b32.xlu1 %v1110_v62, %s3211_s12 }
 0xd39   :  { %v999_v63 = vpop.permute.xlu0 %998 }
 0xd3a   :  { %v1001_v0 = vmul.f32 %v3068_v42, %v999_v63 }
 0xd3c   :  { %1003 = vrot.lane.b32.xlu0 %v1001_v0, %s3209_s10 }
 0xd3f   :  { %v1112_v2 = vpop.permute.xlu1 %1111 }
 0xd40   :  { %v1114_v3 = vmul.f32 %v3070_v46, %v1112_v2 }
 0xd42   :  { %1116 = vrot.lane.b32.xlu1 %v1114_v3, %s3209_s10 }
 0xdae   :  { %v1004_v4 = vpop.permute.xlu0 %1003 }
 0xdaf   :  { %v3469_v5 = vadd.f32 %v3072_v56, %v1004_v4 }
 0xdb1   :  { %1008 = vrot.lane.b32.xlu0 %v3469_v5, %s3210_s11 }
 0xdb4   :  { %v1117_v6 = vpop.permute.xlu1 %1116 }
 0xdb5   :  { %v1119_v7 = vadd.f32 %v3074_v59, %v1117_v6 }
 0xdb7   :  { %v1121_v9 = vrot.slane %v1119_v7, 3 }
 0xdb9   :  { %1122 = vrot.lane.b32.xlu1 %v1121_v9, %s3210_s11 }
 0xe23   :  { %v1009_v10 = vpop.permute.xlu0 %1008 }
 0xe24   :  { %1083 = vst.msk [vmem:[#allocation5 + $0x2] sm:$0x1] %vm508_vm5, %v1009_v10  ;;  %2707 = vmatmul.mubr.msk.f32.vlgmr.msra.gmra.mrb[6].mxu1 %vm156_vm4, %v1009_v10 }
 0xe25   :  { %2929 = vmatpush3.bf16.msra.mxu1 %v3334_v47  ;;  %2728 = vmatprep.mubr.msk.f32.mxu1 %vm3207_vm0, %v3208_v8 }
 0xe26   :  { %2930 = vmatprep.subr.bf16.mxu1 %v3206_v1 }
 0xe29   :  { %2932 = vmatpush3.bf16.msra.mxu1 %v3347_v51 }
 0xe2a   :  { %2939 = vmatprep.subr.bf16.mxu1 %v3206_v1 }
 0xe2b   :  { %v1123_v11 = vpop.permute.xlu1 %1122 }
 0xe2c   :  { %2718 = vmatmul.mubr.msk.f32.vlgmr.msra.gmra.mrb[10].mxu0 %vm156_vm4, %v1123_v11  ;;  %2729 = vmatmul.mubr.msk.f32.vlgmr.msra.gmra.mrb[6].mxu1 %vm156_vm4, %v1123_v11 }
 0xe2d   :  { %2935 = vmatpush3.bf16.msra.mxu0 %v3379_v31  ;;  %2739 = vmatprep.mubr.msk.f32.mxu0 %vm3207_vm0, %v3208_v8 }
 0xe2e   :  { %2936 = vmatprep.subr.bf16.mxu0 %v3206_v1  ;;  %2941 = vmatpush3.bf16.msra.mxu1 %v3329_v43 }
 0xe2f   :  { %2942 = vmatprep.subr.bf16.mxu1 %v3206_v1  ;;  %2750 = vmatprep.mubr.msk.f32.mxu1 %vm3207_vm0, %v3208_v8 }
 0xe31   :  { %2938 = vmatpush3.bf16.msra.mxu0 %v3383_v33 }
 0xe32   :  { %2945 = vmatprep.subr.bf16.mxu0 %v3206_v1  ;;  %2944 = vmatpush3.bf16.msra.mxu1 %v3343_v50 }
 0xe33   :  { %2951 = vmatprep.subr.bf16.mxu1 %v3206_v1 }
 0xeff   :  { %v1192_v12 = vpop.f32.mrb[10].mxu0  ;;  %v1262_v13 = vpop.f32.mrb[6].mxu1 }
 0xf00   :  { %v1372_v14 = vrot.slane %v1192_v12, 4  ;;  %v3001_v15 = vadd.f32 %v1262_v13, %v3369_v57  ;;  %v2719_v16 = vpop.f32.mrb[11].mxu0  ;;  %v2730_v17 = vpop.f32.mrb[7].mxu1 }
 0xf02   :  { %v1374_v18 = vadd.f32 %v1372_v14, %v3318_v28  ;;  %1273 = vrot.lane.b32.xlu0 %v3001_v15, %s3209_s10  ;;  %v2439_v19 = vmul.f32 -1.442695, %v3001_v15 }
 0xf04   :  { %1382 = vrot.lane.b32.xlu1 %v1374_v18, %s3209_s10  ;;  %v2441_v20 = vmul.f32 -1.442695, %v1374_v18  ;;  %3075 = vpow2.f32 %v2439_v19 }
 0xf06   :  { %3077 = vpow2.f32 %v2441_v20 }
 0xf0e   :  { %v3076_v21 = vpop.eup %3075 }
 0xf0f   :  { %v1269_v23 = vadd.f32 1.0, %v3076_v21 }
 0xf10   :  { %v3078_v22 = vpop.eup %3077 }
 0xf11   :  { %v1378_v24 = vadd.f32 1.0, %v3078_v22  ;;  %3079 = vrcp.f32 %v1269_v23 }
 0xf13   :  { %3081 = vrcp.f32 %v1378_v24 }
 0xf1b   :  { %v3080_v25 = vpop.eup %3079 }
 0xf1d   :  { %v3082_v29 = vpop.eup %3081 }
 0xf74   :  { %v1274_v26 = vpop.permute.xlu0 %1273 }
 0xf75   :  { %v1276_v27 = vmul.f32 %v3080_v25, %v1274_v26 }
 0xf76   :  { %v1383_v30 = vpop.permute.xlu1 %1382 }
 0xf77   :  { %v1385_v32 = vmul.f32 %v3082_v29, %v1383_v30  ;;  %1278 = vrot.lane.b32.xlu0 %v1276_v27, %s3210_s11 }
 0xf79   :  { %1387 = vrot.lane.b32.xlu1 %v1385_v32, %s3210_s11 }
 0xfe9   :  { %v1279_v34 = vpop.permute.xlu0 %1278 }
 0xfea   :  { %v1281_v35 = vadd.f32 %v3001_v15, %v1279_v34 }
 0xfeb   :  { %v1388_v36 = vpop.permute.xlu1 %1387 }
 0xfec   :  { %3083 = vtanh.f32 %v1281_v35  ;;  %v1390_v37 = vadd.f32 %v1388_v36, %v1374_v18 }
 0xfee   :  { %3085 = vtanh.f32 %v1390_v37 }
 0xff6   :  { %v3084_v38 = vpop.eup %3083 }
 0xff7   :  { %v1283_v39 = vsub.f32 %v3469_v5, %v3084_v38 }
 0xff8   :  { %v3086_v40 = vpop.eup %3085 }
 0xff9   :  { %1285 = vrot.lane.b32.xlu0 %v1283_v39, %s3211_s12  ;;  %v1393_v41 = vrot.slane %v3086_v40, 1 }
 0xffb   :  { %v1395_v42 = vsub.f32 %v1119_v7, %v1393_v41 }
 0xffd   :  { %v1397_v44 = vrot.slane %v1395_v42, 7 }
 0xfff   :  { %1398 = vrot.lane.b32.xlu1 %v1397_v44, %s3211_s12 }
0x106b   :  { %v1286_v45 = vpop.permute.xlu0 %1285 }
0x106c   :  { %v1288_v46 = vmul.f32 %v3080_v25, %v1286_v45 }
0x106e   :  { %1290 = vrot.lane.b32.xlu0 %v1288_v46, %s3209_s10 }
0x1071   :  { %v1399_v48 = vpop.permute.xlu1 %1398 }
0x1072   :  { %v1401_v49 = vmul.f32 %v3082_v29, %v1399_v48 }
0x1074   :  { %1403 = vrot.lane.b32.xlu1 %v1401_v49, %s3209_s10 }
0x10e0   :  { %v1291_v52 = vpop.permute.xlu0 %1290 }
0x10e1   :  { %v3507_v53 = vadd.f32 %v3084_v38, %v1291_v52 }
0x10e3   :  { %1295 = vrot.lane.b32.xlu0 %v3507_v53, %s3210_s11 }
0x10e6   :  { %v1404_v54 = vpop.permute.xlu1 %1403 }
0x10e7   :  { %v1406_v55 = vadd.f32 %v3086_v40, %v1404_v54 }
0x10e9   :  { %v1408_v56 = vrot.slane %v1406_v55, 4 }
0x10eb   :  { %1409 = vrot.lane.b32.xlu1 %v1408_v56, %s3210_s11 }
0x1155   :  { %v1296_v58 = vpop.permute.xlu0 %1295 }
0x1156   :  { %1370 = vst.msk [vmem:[#allocation5 + $0x3] sm:$0x1] %vm508_vm5, %v1296_v58  ;;  %2740 = vmatmul.mubr.msk.f32.vlgmr.msra.gmra.mrb[12].mxu0 %vm156_vm4, %v1296_v58 }
0x1157   :  { %2947 = vmatpush3.bf16.msra.mxu0 %v3334_v47  ;;  %2761 = vmatprep.mubr.msk.f32.mxu0 %vm3207_vm0, %v3208_v8 }
0x1158   :  { %2948 = vmatprep.subr.bf16.mxu0 %v3206_v1 }
0x115b   :  { %2950 = vmatpush3.bf16.msra.mxu0 %v3347_v51 }
0x115c   :  { %2957 = vmatprep.subr.bf16.mxu0 %v3206_v1 }
0x115d   :  { %v1410_v59 = vpop.permute.xlu1 %1409 }
0x115e   :  { %2751 = vmatmul.mubr.msk.f32.vlgmr.msra.gmra.mrb[8].mxu1 %vm156_vm4, %v1410_v59  ;;  %2762 = vmatmul.mubr.msk.f32.vlgmr.msra.gmra.mrb[12].mxu0 %vm156_vm4, %v1410_v59 }
0x115f   :  { %2953 = vmatpush3.bf16.msra.mxu1 %v3379_v31  ;;  %2772 = vmatprep.mubr.msk.f32.mxu1 %vm3207_vm0, %v3208_v8 }
0x1160   :  { %2954 = vmatprep.subr.bf16.mxu1 %v3206_v1  ;;  %2959 = vmatpush3.bf16.msra.mxu0 %v3329_v43 }
0x1161   :  { %2960 = vmatprep.subr.bf16.mxu0 %v3206_v1  ;;  %2783 = vmatprep.mubr.msk.f32.mxu0 %vm3207_vm0, %v3208_v8 }
0x1163   :  { %2956 = vmatpush3.bf16.msra.mxu1 %v3383_v33 }
0x1164   :  { %2963 = vmatprep.subr.bf16.mxu1 %v3206_v1  ;;  %2962 = vmatpush3.bf16.msra.mxu0 %v3343_v50 }
0x1165   :  { %2969 = vmatprep.subr.bf16.mxu0 %v3206_v1 }
0x1231   :  { %v1479_v60 = vpop.f32.mrb[8].mxu1  ;;  %v1549_v61 = vpop.f32.mrb[12].mxu0 }
0x1232   :  { %v1659_v62 = vrot.slane %v1479_v60, 3  ;;  %v3002_v63 = vadd.f32 %v1549_v61, %v3369_v57  ;;  %v2752_v0 = vpop.f32.mrb[9].mxu1  ;;  %v2763_v2 = vpop.f32.mrb[13].mxu0 }
0x1234   :  { %v1661_v3 = vadd.f32 %v1659_v62, %v3318_v28  ;;  %1560 = vrot.lane.b32.xlu0 %v3002_v63, %s3209_s10  ;;  %v2444_v4 = vmul.f32 -1.442695, %v3002_v63 }
0x1236   :  { %1669 = vrot.lane.b32.xlu1 %v1661_v3, %s3209_s10  ;;  %v2446_v5 = vmul.f32 -1.442695, %v1661_v3  ;;  %3087 = vpow2.f32 %v2444_v4 }
0x1238   :  { %3089 = vpow2.f32 %v2446_v5 }
0x1240   :  { %v3088_v6 = vpop.eup %3087 }
0x1241   :  { %v1556_v9 = vadd.f32 1.0, %v3088_v6 }
0x1242   :  { %v3090_v7 = vpop.eup %3089 }
0x1243   :  { %v1665_v10 = vadd.f32 1.0, %v3090_v7  ;;  %3091 = vrcp.f32 %v1556_v9 }
0x1245   :  { %3093 = vrcp.f32 %v1665_v10 }
0x124d   :  { %v3092_v11 = vpop.eup %3091 }
0x124f   :  { %v3094_v14 = vpop.eup %3093 }
0x12a6   :  { %v1561_v12 = vpop.permute.xlu0 %1560 }
0x12a7   :  { %v1563_v13 = vmul.f32 %v3092_v11, %v1561_v12 }
0x12a8   :  { %v1670_v15 = vpop.permute.xlu1 %1669 }
0x12a9   :  { %v1672_v16 = vmul.f32 %v3094_v14, %v1670_v15  ;;  %1565 = vrot.lane.b32.xlu0 %v1563_v13, %s3210_s11 }
0x12ab   :  { %1674 = vrot.lane.b32.xlu1 %v1672_v16, %s3210_s11 }
0x131b   :  { %v1566_v17 = vpop.permute.xlu0 %1565 }
0x131c   :  { %v1568_v18 = vadd.f32 %v3002_v63, %v1566_v17 }
0x131d   :  { %v1675_v19 = vpop.permute.xlu1 %1674 }
0x131e   :  { %3095 = vtanh.f32 %v1568_v18  ;;  %v1677_v20 = vadd.f32 %v1675_v19, %v1661_v3 }
0x1320   :  { %3097 = vtanh.f32 %v1677_v20 }
0x1328   :  { %v3096_v21 = vpop.eup %3095 }
0x1329   :  { %v1570_v22 = vsub.f32 %v3507_v53, %v3096_v21 }
0x132a   :  { %v3098_v23 = vpop.eup %3097 }
0x132b   :  { %1572 = vrot.lane.b32.xlu0 %v1570_v22, %s3211_s12  ;;  %v1680_v24 = vrot.slane %v3098_v23, 1 }
0x132d   :  { %v1682_v25 = vsub.f32 %v1406_v55, %v1680_v24 }
0x132f   :  { %v1684_v26 = vrot.slane %v1682_v25, 7 }
0x1331   :  { %1685 = vrot.lane.b32.xlu1 %v1684_v26, %s3211_s12 }
0x139d   :  { %v1573_v27 = vpop.permute.xlu0 %1572 }
0x139e   :  { %v1575_v29 = vmul.f32 %v3092_v11, %v1573_v27 }
0x13a0   :  { %1577 = vrot.lane.b32.xlu0 %v1575_v29, %s3209_s10 }
0x13a3   :  { %v1686_v30 = vpop.permute.xlu1 %1685 }
0x13a4   :  { %v1688_v32 = vmul.f32 %v3094_v14, %v1686_v30 }
0x13a6   :  { %1690 = vrot.lane.b32.xlu1 %v1688_v32, %s3209_s10 }
0x1412   :  { %v1578_v34 = vpop.permute.xlu0 %1577 }
0x1413   :  { %v3545_v35 = vadd.f32 %v3096_v21, %v1578_v34 }
0x1415   :  { %1582 = vrot.lane.b32.xlu0 %v3545_v35, %s3210_s11 }
0x1418   :  { %v1691_v36 = vpop.permute.xlu1 %1690 }
0x1419   :  { %v1693_v37 = vadd.f32 %v3098_v23, %v1691_v36 }
0x141b   :  { %v1695_v38 = vrot.slane %v1693_v37, 5 }
0x141d   :  { %1696 = vrot.lane.b32.xlu1 %v1695_v38, %s3210_s11 }
0x1487   :  { %v1583_v39 = vpop.permute.xlu0 %1582 }
0x1488   :  { %1657 = vst.msk [vmem:[#allocation5 + $0x4] sm:$0x1] %vm508_vm5, %v1583_v39  ;;  %2773 = vmatmul.mubr.msk.f32.vlgmr.msra.gmra.mrb[10].mxu1 %vm156_vm4, %v1583_v39 }
0x1489   :  { %2965 = vmatpush3.bf16.msra.mxu1 %v3334_v47  ;;  %2794 = vmatprep.mubr.msk.f32.mxu1 %vm3207_vm0, %v3208_v8 }
0x148a   :  { %2966 = vmatprep.subr.bf16.mxu1 %v3206_v1 }
0x148d   :  { %2968 = vmatpush3.bf16.msra.mxu1 %v3347_v51 }
0x148e   :  { %2975 = vmatprep.subr.bf16.mxu1 %v3206_v1 }
0x148f   :  { %v1697_v40 = vpop.permute.xlu1 %1696 }
0x1490   :  { %2784 = vmatmul.mubr.msk.f32.vlgmr.msra.gmra.mrb[14].mxu0 %vm156_vm4, %v1697_v40  ;;  %2795 = vmatmul.mubr.msk.f32.vlgmr.msra.gmra.mrb[10].mxu1 %vm156_vm4, %v1697_v40 }
0x1491   :  { %2971 = vmatpush3.bf16.msra.mxu0 %v3379_v31  ;;  %2805 = vmatprep.mubr.msk.f32.mxu0 %vm3207_vm0, %v3208_v8 }
0x1492   :  { %2972 = vmatprep.subr.bf16.mxu0 %v3206_v1  ;;  %2977 = vmatpush3.bf16.msra.mxu1 %v3329_v43 }
0x1493   :  { %2978 = vmatprep.subr.bf16.mxu1 %v3206_v1  ;;  %2816 = vmatprep.mubr.msk.f32.mxu1 %vm3207_vm0, %v3208_v8 }
0x1495   :  { %2974 = vmatpush3.bf16.msra.mxu0 %v3383_v33 }
0x1496   :  { %2981 = vmatprep.subr.bf16.mxu0 %v3206_v1  ;;  %2980 = vmatpush3.bf16.msra.mxu1 %v3343_v50 }
0x1497   :  { %2987 = vmatprep.subr.bf16.mxu1 %v3206_v1 }
0x1563   :  { %v1766_v41 = vpop.f32.mrb[14].mxu0  ;;  %v1836_v42 = vpop.f32.mrb[10].mxu1 }
0x1564   :  { %v1946_v44 = vrot.slane %v1766_v41, 2  ;;  %v3003_v45 = vadd.f32 %v1836_v42, %v3369_v57  ;;  %v2785_v46 = vpop.f32.mrb[15].mxu0  ;;  %v2796_v43 = vpop.f32.mrb[11].mxu1 }
0x1566   :  { %v1948_v48 = vadd.f32 %v1946_v44, %v3318_v28  ;;  %1847 = vrot.lane.b32.xlu0 %v3003_v45, %s3209_s10  ;;  %v2449_v49 = vmul.f32 -1.442695, %v3003_v45 }
0x1568   :  { %1956 = vrot.lane.b32.xlu1 %v1948_v48, %s3209_s10  ;;  %v2451_v52 = vmul.f32 -1.442695, %v1948_v48  ;;  %3099 = vpow2.f32 %v2449_v49 }
0x156a   :  { %3101 = vpow2.f32 %v2451_v52 }
0x1572   :  { %v3100_v50 = vpop.eup %3099 }
0x1573   :  { %v1843_v54 = vadd.f32 1.0, %v3100_v50 }
0x1574   :  { %v3102_v53 = vpop.eup %3101 }
0x1575   :  { %v1952_v55 = vadd.f32 1.0, %v3102_v53  ;;  %3103 = vrcp.f32 %v1843_v54 }
0x1577   :  { %3105 = vrcp.f32 %v1952_v55 }
0x157f   :  { %v3104_v56 = vpop.eup %3103 }
0x1581   :  { %v3106_v60 = vpop.eup %3105 }
0x15d8   :  { %v1848_v58 = vpop.permute.xlu0 %1847 }
0x15d9   :  { %v1850_v59 = vmul.f32 %v3104_v56, %v1848_v58 }
0x15da   :  { %v1957_v61 = vpop.permute.xlu1 %1956 }
0x15db   :  { %v1959_v62 = vmul.f32 %v3106_v60, %v1957_v61  ;;  %1852 = vrot.lane.b32.xlu0 %v1850_v59, %s3210_s11 }
0x15dd   :  { %1961 = vrot.lane.b32.xlu1 %v1959_v62, %s3210_s11 }
0x164d   :  { %v1853_v63 = vpop.permute.xlu0 %1852 }
0x164e   :  { %v1855_v0 = vadd.f32 %v3003_v45, %v1853_v63 }
0x164f   :  { %v1962_v2 = vpop.permute.xlu1 %1961 }
0x1650   :  { %3107 = vtanh.f32 %v1855_v0  ;;  %v1964_v3 = vadd.f32 %v1962_v2, %v1948_v48  ;;  %v3129_v2 = vld [vmem:[%s3659_s4 + $0x1] sm:$0x1]  ;;  %s3212_s4 = smov [#allocation5]  }
0x1651   :  { %s2389_s22 = sshll.u32 %s3212_s4, 4  ;;  %s2390_s22 = int_to_ptr.vmem [resolvable:$true] %s2389_s22 }
0x1652   :  { %3109 = vtanh.f32 %v1964_v3  ;;  %s3152_s25 = scalar_lea.vmem %s2390_s22, 128  ;;  %p3157_p9 = scmp.lt.s32.totalorder %s2390_s22, %s2390_s22 }
0x1653   :  { %p3153_p8 = scmp.ne.s32.totalorder %s2390_s22, %s3152_s25  ;;  %p3158_p10 = scmp.lt.s32.totalorder %s3152_s25, %s3152_s25 }
0x1655   :  { %p3159_p11 = por %p3158_p10, %p3157_p9 }
0x1657   :  { %p3160_p12 = pnand %p3159_p11, %p3153_p8 }
0x165a   :  { %v3108_v4 = vpop.eup %3107 }
0x165b   :  { %v1857_v5 = vsub.f32 %v3545_v35, %v3108_v4 }
0x165c   :  { %v3110_v6 = vpop.eup %3109 }
0x165d   :  { %1859 = vrot.lane.b32.xlu0 %v1857_v5, %s3211_s12  ;;  %v1967_v7 = vrot.slane %v3110_v6, 1 }
0x165f   :  { %v1969_v9 = vsub.f32 %v1693_v37, %v1967_v7 }
0x1661   :  { %v1971_v10 = vrot.slane %v1969_v9, 7 }
0x1663   :  { %1972 = vrot.lane.b32.xlu1 %v1971_v10, %s3211_s12 }
0x16cf   :  { %v1860_v11 = vpop.permute.xlu0 %1859 }
0x16d0   :  { %v1862_v12 = vmul.f32 %v3104_v56, %v1860_v11 }
0x16d2   :  { %1864 = vrot.lane.b32.xlu0 %v1862_v12, %s3209_s10 }
0x16d5   :  { %v1973_v13 = vpop.permute.xlu1 %1972 }
0x16d6   :  { %v1975_v14 = vmul.f32 %v3106_v60, %v1973_v13 }
0x16d8   :  { %1977 = vrot.lane.b32.xlu1 %v1975_v14, %s3209_s10 }
0x1744   :  { %v1865_v15 = vpop.permute.xlu0 %1864 }
0x1745   :  { %v1867_v16 = vadd.f32 %v3108_v4, %v1865_v15 }
0x1747   :  { %1869 = vrot.lane.b32.xlu0 %v1867_v16, %s3210_s11 }
0x174a   :  { %v1978_v17 = vpop.permute.xlu1 %1977 }
0x174b   :  { %v1980_v18 = vadd.f32 %v3110_v6, %v1978_v17 }
0x174d   :  { %v1982_v19 = vrot.slane %v1980_v18, 6 }
0x174f   :  { %1983 = vrot.lane.b32.xlu1 %v1982_v19, %s3210_s11 }
0x17b9   :  { %v1870_v20 = vpop.permute.xlu0 %1869 }
0x17ba   :  { %1944 = vst.msk [vmem:[#allocation5 + $0x5] sm:$0x1] %vm508_vm5, %v1870_v20  ;;  %2806 = vmatmul.mubr.msk.f32.vlgmr.msra.gmra.mrb[16].mxu0 %vm156_vm4, %v1870_v20 }
0x17bb   :  { %2983 = vmatpush3.bf16.msra.mxu0 %v3334_v47  ;;  %2827 = vmatprep.mubr.msk.f32.mxu0 %vm3207_vm0, %v3208_v8 }
0x17bc   :  { %2984 = vmatprep.subr.bf16.mxu0 %v3206_v1 }
0x17bf   :  { %2986 = vmatpush3.bf16.msra.mxu0 %v3347_v51 }
0x17c1   :  { %v1984_v21 = vpop.permute.xlu1 %1983 }
0x17c2   :  { %2817 = vmatmul.mubr.msk.f32.vlgmr.msra.gmra.mrb[12].mxu1 %vm156_vm4, %v1984_v21  ;;  %2828 = vmatmul.mubr.msk.f32.vlgmr.msra.gmra.mrb[16].mxu0 %vm156_vm4, %v1984_v21 }
0x17c3   :  { %2989 = vmatpush3.bf16.msra.mxu1 %v3379_v31  ;;  %2838 = vmatprep.mubr.msk.f32.mxu1 %vm3207_vm0, %v3208_v8 }
0x17c4   :  { %2990 = vmatprep.subr.bf16.mxu1 %v3206_v1 }
0x17c7   :  { %2992 = vmatpush3.bf16.msra.mxu1 %v3383_v33 }
0x17c8   :  { %2993 = vmatprep.subr.bf16.mxu1 %v3206_v1 }
0x1895   :  { %v2053_v22 = vpop.f32.mrb[12].mxu1  ;;  %v2123_v23 = vpop.f32.mrb[16].mxu0 }
0x1896   :  { %v2233_v24 = vrot.slane %v2053_v22, 1  ;;  %v3004_v25 = vadd.f32 %v2123_v23, %v3369_v57  ;;  %v2818_v26 = vpop.f32.mrb[13].mxu1  ;;  %v2829_v27 = vpop.f32.mrb[17].mxu0 }
0x1898   :  { %v2235_v29 = vadd.f32 %v2233_v24, %v3318_v28  ;;  %2134 = vrot.lane.b32.xlu0 %v3004_v25, %s3209_s10  ;;  %v2454_v31 = vmul.f32 -1.442695, %v3004_v25 }
0x189a   :  { %2243 = vrot.lane.b32.xlu1 %v2235_v29, %s3209_s10  ;;  %v2456_v30 = vmul.f32 -1.442695, %v2235_v29  ;;  %3111 = vpow2.f32 %v2454_v31 }
0x189c   :  { %3113 = vpow2.f32 %v2456_v30 }
0x18a4   :  { %v3112_v33 = vpop.eup %3111 }
0x18a5   :  { %v2130_v34 = vadd.f32 1.0, %v3112_v33 }
0x18a6   :  { %v3114_v32 = vpop.eup %3113 }
0x18a7   :  { %v2239_v35 = vadd.f32 1.0, %v3114_v32  ;;  %3115 = vrcp.f32 %v2130_v34 }
0x18a9   :  { %3117 = vrcp.f32 %v2239_v35 }
0x18b1   :  { %v3116_v36 = vpop.eup %3115 }
0x18b3   :  { %v3118_v38 = vpop.eup %3117 }
0x190a   :  { %v2135_v57 = vpop.permute.xlu0 %2134 }
0x190b   :  { %v2137_v37 = vmul.f32 %v3116_v36, %v2135_v57 }
0x190c   :  { %v2244_v39 = vpop.permute.xlu1 %2243 }
0x190d   :  { %v2246_v28 = vmul.f32 %v3118_v38, %v2244_v39  ;;  %2139 = vrot.lane.b32.xlu0 %v2137_v37, %s3210_s11 }
0x190f   :  { %2248 = vrot.lane.b32.xlu1 %v2246_v28, %s3210_s11 }
0x197f   :  { %v2140_v40 = vpop.permute.xlu0 %2139 }
0x1980   :  { %v2142_v41 = vadd.f32 %v3004_v25, %v2140_v40 }
0x1981   :  { %v2249_v42 = vpop.permute.xlu1 %2248 }
0x1982   :  { %3119 = vtanh.f32 %v2142_v41  ;;  %v2251_v44 = vadd.f32 %v2249_v42, %v2235_v29 }
0x1984   :  { %3121 = vtanh.f32 %v2251_v44 }
0x198c   :  { %v3120_v45 = vpop.eup %3119 }
0x198d   :  { %v2144_v46 = vsub.f32 %v1867_v16, %v3120_v45 }
0x198e   :  { %v3122_v43 = vpop.eup %3121 }
0x198f   :  { %2146 = vrot.lane.b32.xlu0 %v2144_v46, %s3211_s12  ;;  %v2254_v48 = vrot.slane %v3122_v43, 1 }
0x1991   :  { %v2256_v49 = vsub.f32 %v1980_v18, %v2254_v48 }
0x1993   :  { %v2258_v52 = vrot.slane %v2256_v49, 7 }
0x1995   :  { %2259 = vrot.lane.b32.xlu1 %v2258_v52, %s3211_s12 }
0x1a01   :  { %v2147_v50 = vpop.permute.xlu0 %2146 }
0x1a02   :  { %v2149_v53 = vmul.f32 %v3116_v36, %v2147_v50 }
0x1a04   :  { %2151 = vrot.lane.b32.xlu0 %v2149_v53, %s3209_s10 }
0x1a07   :  { %v2260_v54 = vpop.permute.xlu1 %2259 }
0x1a08   :  { %v2262_v55 = vmul.f32 %v3118_v38, %v2260_v54 }
0x1a0a   :  { %2264 = vrot.lane.b32.xlu1 %v2262_v55, %s3209_s10 }
0x1a76   :  { %v2152_v56 = vpop.permute.xlu0 %2151 }
0x1a77   :  { %v2154_v58 = vadd.f32 %v3120_v45, %v2152_v56 }
0x1a79   :  { %2156 = vrot.lane.b32.xlu0 %v2154_v58, %s3210_s11 }
0x1a7c   :  { %v2265_v59 = vpop.permute.xlu1 %2264 }
0x1a7d   :  { %v2267_v60 = vadd.f32 %v3122_v43, %v2265_v59 }
0x1a7f   :  { %v2269_v61 = vrot.slane %v2267_v60, 7 }
0x1a81   :  { %2270 = vrot.lane.b32.xlu1 %v2269_v61, %s3210_s11 }
0x1aeb   :  { %v2157_v62 = vpop.permute.xlu0 %2156 }
0x1aec   :  { %2231 = vst.msk [vmem:[#allocation5 + $0x6] sm:$0x1] %vm508_vm5, %v2157_v62  ;;  %2839 = vmatmul.mubr.msk.f32.vlgmr.msra.gmra.mrb[14].mxu1 %vm156_vm4, %v2157_v62 }
0x1aed   :  { %2995 = vmatpush3.bf16.msra.mxu1 %v3334_v47  ;;  %2849 = vmatprep.mubr.msk.f32.mxu1 %vm3207_vm0, %v3208_v8 }
0x1aee   :  { %2996 = vmatprep.subr.bf16.mxu1 %v3206_v1 }
0x1af1   :  { %2998 = vmatpush3.bf16.msra.mxu1 %v3347_v51 }
0x1af3   :  { %v2271_v63 = vpop.permute.xlu1 %2270 }
0x1af4   :  { %2850 = vmatmul.mubr.msk.f32.vlgmr.msra.gmra.mrb[14].mxu1 %vm156_vm4, %v2271_v63 }
0x1bc7   :  { %v2340_v0 = vpop.f32.mrb[14].mxu1 }
0x1bc8   :  { %v3005_v3 = vadd.f32 %v3129_v2, %v2340_v0  ;;  %v2851_v4 = vpop.f32.mrb[15].mxu1 }
0x1bca   :  { %2351 = vrot.lane.b32.xlu0 %v3005_v3, %s3209_s10  ;;  %v2458_v47 = vmul.f32 -1.442695, %v3005_v3 }
0x1bcc   :  { %3123 = vpow2.f32 %v2458_v47 }
0x1bd6   :  { %v3124_v5 = vpop.eup %3123 }
0x1bd7   :  { %v2347_v8 = vadd.f32 1.0, %v3124_v5 }
0x1bd9   :  { %3125 = vrcp.f32 %v2347_v8 }
0x1be3   :  { %v3126_v1 = vpop.eup %3125 }
0x1c3c   :  { %v2352_v6 = vpop.permute.xlu0 %2351 }
0x1c3d   :  { %v2354_v51 = vmul.f32 %v3126_v1, %v2352_v6 }
0x1c3f   :  { %2356 = vrot.lane.b32.xlu1 %v2354_v51, %s3210_s11 }
0x1cb1   :  { %v2357_v7 = vpop.permute.xlu1 %2356 }
0x1cb2   :  { %v2359_v9 = vadd.f32 %v3005_v3, %v2357_v7 }
0x1cb4   :  { %3127 = vtanh.f32 %v2359_v9 }
0x1cbe   :  { %v3128_v10 = vpop.eup %3127 }
0x1cbf   :  { %v2361_v11 = vsub.f32 %v2154_v58, %v3128_v10 }
0x1cc1   :  { %2363 = vrot.lane.b32.xlu0 %v2361_v11, %s3211_s12 }
0x1d33   :  { %v2364_v12 = vpop.permute.xlu0 %2363 }
0x1d34   :  { %v2366_v13 = vmul.f32 %v3126_v1, %v2364_v12 }
0x1d36   :  { %2368 = vrot.lane.b32.xlu1 %v2366_v13, %s3209_s10 }
0x1d3a   :  { %2377 = vrot.lane.b32.xlu1 %v2267_v60, %s3210_s11 }
0x1da8   :  { %v2369_v14 = vpop.permute.xlu1 %2368 }
0x1da9   :  { %v2371_v15 = vadd.f32 %v3128_v10, %v2369_v14 }
0x1dab   :  { %2373 = vrot.lane.b32.xlu0 %v2371_v15, %s3210_s11 }
0x1dac   :  { %v2378_v16 = vpop.permute.xlu1 %2377 }
0x1dad   :  { %2381 = vst.msk [vmem:[#allocation6 - $0x7] sm:$0x80] %vm2380_vm6, %v2378_v16 }
0x1e1d   :  { %v2374_v17 = vpop.permute.xlu0 %2373 }
0x1e1e   :  { %2376 = vst.msk [vmem:[#allocation5 + $0x7] sm:$0x1] %vm508_vm5, %v2374_v17  ;;  %2382 = vst.msk [vmem:[#allocation6 + $0x1] sm:$0x1] %vm508_vm5, %v2374_v17 }
0x1e1f   :  { %3163 = shalt.err (!%p3160_p12)
}
0x1e20   :  { %s3164_s28 = scalar_lea.hbm %s3660_s5, 128 }
0x1e21   :  { %p3165_p13 = scmp.ne.s32.totalorder %s3660_s5, %s3164_s28  ;;  %p3168_p0 = scmp.lt.u32.totalorder %s3164_s28, %s3660_s5 }
0x1e23   :  { %p3170_p1 = pnand %p3168_p0, %p3165_p13 }
0x1e25   :  { %3173 = shalt.err (!%p3170_p1)
}
0x1e26   :  { %2392 = dma.vmem_to_hbm [thread:$0]  %s2390_s22, 128, %s3660_s5, [#allocation4]  }
0x1e27   :  { %s3174_s10 = scalar_lea.vmem %s2400_s24, 32  ;;  %p3179_p3 = scmp.lt.s32.totalorder %s2400_s24, %s2400_s24 }
0x1e28   :  { %p3175_p2 = scmp.ne.s32.totalorder %s2400_s24, %s3174_s10  ;;  %p3180_p4 = scmp.lt.s32.totalorder %s3174_s10, %s3174_s10 }
0x1e2a   :  { %p3181_p5 = por %p3180_p4, %p3179_p3 }
0x1e2c   :  { %p3182_p6 = pnand %p3181_p5, %p3175_p2 }
0x1e2e   :  { %3185 = shalt.err (!%p3182_p6)
}
0x1e2f   :  { %s3186_s13 = scalar_lea.hbm %s3661_s6, 32 }
0x1e30   :  { %p3187_p7 = scmp.ne.s32.totalorder %s3661_s6, %s3186_s13  ;;  %p3190_p8 = scmp.lt.u32.totalorder %s3186_s13, %s3661_s6 }
0x1e32   :  { %p3192_p9 = pnand %p3190_p8, %p3187_p7 }
0x1e34   :  { %3195 = shalt.err (!%p3192_p9)
}
0x1e35   :  { %2402 = dma.vmem_to_hbm [thread:$0]  %s2400_s24, 32, %s3661_s6, [#allocation7]  }
0x1e36   :  { %3198 = dma.done.wait [#allocation4], 128  }
0x1e37   :  { %3199 = vsyncadd [#allocation4], 4294967168 }
0x1e38   :  { %3200 = dma.done.wait [#allocation7], 32  }
0x1e39   :  { %3201 = vsyncadd [#allocation7], 4294967264 }
0x1e3a   :  { %2409 = vsyncpa [#allocation3], 1 }
0x1e3b   :  { %2410 = vsyncpa [#allocation4], 1 }
0x1e3c   :  { %2411 = vsyncpa [#allocation7], 1 }

</bundles_post_ra>
